<compile_context>
chip_gen: v6e
topology: v6e:2x2x1
jax: 0.10.0
libtpu: 0.0.40
codegen_flags: <defaults>
</compile_context>

<pallas_src>
import math

import jax
import jax.numpy as jnp
from jax.experimental import pallas as pl
from jax.experimental.pallas import tpu as pltpu


# ----------------------------------------------------------------------------
# Pallas kernel: full MLP trunk (fc1 + 4 residual blocks + fc6) for all 4 views
# stacked along the batch axis, plus the fused rotation / multi-view epilogue.
# Hidden weights are streamed from HBM with manual double-buffering.
# ----------------------------------------------------------------------------
def _mlp_kernel(x_ref, w1_ref, b1_ref, wh_hbm, bh_ref, w6_ref, b6_ref,
                r_ref, v_ref, o_ref, wbuf, dma_sem):
    N = x_ref.shape[0]          # 4 * B view-stacked rows
    B = N // 4
    PJ = w6_ref.shape[1] // 3   # per-coordinate plane width (multiple of 128)

    def layer_copy(idx, slot):
        return pltpu.make_async_copy(wh_hbm.at[idx], wbuf.at[slot],
                                     dma_sem.at[slot])

    # Kick off the DMA of the first hidden-layer weights; it overlaps fc1.
    layer_copy(0, 0).start()

    # fc1 (+ folded bn1) + relu   (dropout = identity in eval mode)
    # bf16 x bf16 -> f32 accumulation; elementwise stays f32 (v5e-safe).
    h = jnp.dot(x_ref[...], w1_ref[...], preferred_element_type=jnp.float32)
    h = jnp.maximum(h + b1_ref[...], 0.0)

    # 4 residual blocks, hidden layer order: fc2,fc3 | fc4,fc5 | fc7,fc8 | fc9,fc10.
    # Each layer: wait for its weight slice, immediately prefetch the next one
    # into the other buffer, then run the MXU on the current slice.
    for blk in range(4):
        xin = h
        for l in range(2):
            idx = 2 * blk + l          # static Python int -> fully unrolled
            slot = idx & 1
            layer_copy(idx, slot).wait()
            if idx + 1 < 8:
                layer_copy(idx + 1, 1 - slot).start()
            h = jnp.dot(h.astype(jnp.bfloat16), wbuf[slot],
                        preferred_element_type=jnp.float32)
            h = jnp.maximum(h + bh_ref[pl.ds(idx, 1), :], 0.0)
        h = h + xin

    # fc6 (de-normalisation y*sd+mean folded in; coordinate-major, plane-padded)
    y = (jnp.dot(h.astype(jnp.bfloat16), w6_ref[...],
                 preferred_element_type=jnp.float32)
         + b6_ref[...])                                        # (N, 3*PJ)

    # --- fused epilogue: per-view 3x3 rotation + 4-view weighted fusion -----
    r = r_ref[...]            # (N, 9), lane 3*i + c holds R[row, i, c]
    vn = v_ref[...]           # (N, PJ), pre-normalised view weights (zero-padded)
    planes = [y[:, c * PJ:(c + 1) * PJ] for c in range(3)]     # plane_c[n, j] = y[n, j, c]
    for i in range(3):
        rot_i = (r[:, 3 * i + 0:3 * i + 1] * planes[0]
                 + r[:, 3 * i + 1:3 * i + 2] * planes[1]
                 + r[:, 3 * i + 2:3 * i + 3] * planes[2])       # (N, PJ)
        w_i = rot_i * vn
        fused_i = (w_i[0:B] + w_i[B:2 * B]
                   + w_i[2 * B:3 * B] + w_i[3 * B:4 * B])       # (B, PJ)
        o_ref[:, pl.ds(i * PJ, PJ)] = fused_i


def mlp_pallas(x, w1, b1, wh, bh, w6, b6, r, vn):
    n = x.shape[0]
    b = n // 4
    L = w1.shape[1]
    outp = w6.shape[1]

    flops = 2 * n * (x.shape[1] * L + 8 * L * L + L * outp)
    bytes_accessed = sum(int(a.size) * a.dtype.itemsize
                         for a in (x, w1, b1, wh, bh, w6, b6, r, vn))
    bytes_accessed += b * outp * 4   # f32 output

    def vmem():
        return pl.BlockSpec(memory_space=pltpu.MemorySpace.VMEM)

    return pl.pallas_call(
        _mlp_kernel,
        out_shape=jax.ShapeDtypeStruct((b, outp), jnp.float32),
        in_specs=[vmem(), vmem(), vmem(),
                  pl.BlockSpec(memory_space=pl.ANY),   # wh stays in HBM, manual DMA
                  vmem(), vmem(), vmem(), vmem(), vmem()],
        out_specs=vmem(),
        scratch_shapes=[pltpu.VMEM((2, L, L), jnp.bfloat16),
                        pltpu.SemaphoreType.DMA((2,))],
        cost_estimate=pl.CostEstimate(flops=flops, transcendentals=0,
                                      bytes_accessed=bytes_accessed),
    )(x, w1, b1, wh, bh, w6, b6, r, vn)


# ----------------------------------------------------------------------------
# Parameter construction (deterministic, mirrors the PyTorch Kaiming-ish init).
# ----------------------------------------------------------------------------
def init_params(key, linear_size, num_joints):
    names = ["fc1", "fc2", "fc3", "fc4", "fc5", "fc7", "fc8", "fc9", "fc10", "fc6"]
    dims = {
        "fc1": (2 * num_joints, linear_size),
        "fc6": (linear_size, 3 * num_joints),
    }
    params = {}
    for name in names:
        fin, fout = dims.get(name, (linear_size, linear_size))
        key, kw, kb = jax.random.split(key, 3)
        std1 = math.sqrt(2.0 / (fin * fout))
        w = jnp.clip(std1 * jax.random.normal(kw, (fin, fout)), -2 * std1, 2 * std1)
        std2 = math.sqrt(2.0 / fout)
        b = jnp.clip(std2 * jax.random.normal(kb, (fout,)), -2 * std2, 2 * std2)
        params[name] = (w.astype(jnp.float32), b.astype(jnp.float32))
    # BatchNorm1d parameters (PyTorch defaults): gamma=1, beta=0, rm=0, rv=1
    for name in names[:-1]:  # every fc except fc6 is followed by a BN
        fout = params[name][0].shape[1]
        params["bn_" + name] = (
            jnp.ones((fout,), jnp.float32),   # gamma
            jnp.zeros((fout,), jnp.float32),  # beta
            jnp.zeros((fout,), jnp.float32),  # running_mean
            jnp.ones((fout,), jnp.float32),   # running_var
        )
    return params


def _fold_bn(w, b, gamma, beta, rm, rv, eps=1e-5):
    s = gamma / jnp.sqrt(rv + eps)
    return w * s[None, :], b * s + (beta - rm * s)


# ----------------------------------------------------------------------------
# One-time weight preparation: fold BN, fold de-normalisation into fc6, cast
# matmul operands to bf16, re-layout fc6 coordinate-major with 128-lane planes.
# ----------------------------------------------------------------------------
def prepare_weights(params, mean, sd):
    def folded(name):
        w, b = params[name]
        g, be, rm, rv = params["bn_" + name]
        return _fold_bn(w, b, g, be, rm, rv)

    w1, b1 = folded("fc1")
    hidden_names = ["fc2", "fc3", "fc4", "fc5", "fc7", "fc8", "fc9", "fc10"]
    wh = jnp.stack([folded(n)[0] for n in hidden_names], axis=0)  # (8, L, L)
    bh = jnp.stack([folded(n)[1] for n in hidden_names], axis=0)  # (8, L)

    # Fold the output de-normalisation:  (x @ w6 + b6) * sd + mean
    w6, b6 = params["fc6"]
    L = w6.shape[0]
    J = w6.shape[1] // 3
    sd_f = sd.reshape(-1).astype(jnp.float32)
    mean_f = mean.reshape(-1).astype(jnp.float32)
    w6 = w6 * sd_f[None, :]
    b6 = b6 * sd_f + mean_f

    # Re-layout fc6 coordinate-major, one 128-lane-aligned plane per coordinate:
    #   new column  i*PJ + j   <-   original column  3*j + i
    PJ = ((J + 127) // 128) * 128
    w6_cm = jnp.transpose(w6.reshape(L, J, 3), (0, 2, 1))                # (L, 3, J)
    w6_cm = jnp.pad(w6_cm, ((0, 0), (0, 0), (0, PJ - J))).reshape(L, 3 * PJ)
    b6_cm = jnp.pad(b6.reshape(J, 3).T, ((0, 0), (0, PJ - J))).reshape(1, 3 * PJ)

    # TODO(synk): on v7x, wh (and optionally w6) could be stored fp8 with
    # per-layer scales folded into the f32 biases to halve HBM traffic.
    return {
        "w1": w1.astype(jnp.bfloat16),
        "b1": b1.reshape(1, -1).astype(jnp.float32),
        "wh": wh.astype(jnp.bfloat16),
        "bh": bh.astype(jnp.float32),
        "w6": w6_cm.astype(jnp.bfloat16),
        "b6": b6_cm.astype(jnp.float32),
    }


# ----------------------------------------------------------------------------
# Full forward (kernel + minimal glue), jitted.  mean/sd are folded into the
# weights; rotation + fusion happen inside the kernel epilogue.
# For best MXU/DMA amortisation, callers with multiple frames should stack them
# along the batch axis before calling (the kernel is M-agnostic).
# ----------------------------------------------------------------------------
@jax.jit
def linear_model_forward(fw, x1, x2, x3, x4, r1, r2, r3, r4, v1, v2, v3, v4):
    B, J = x1.shape[0], x1.shape[1]
    PJ = fw["w6"].shape[1] // 3

    # x.view(B, -1) per view, stacked along batch: (4B, 2J); bf16 matmul input.
    X = jnp.concatenate(
        [x1.reshape(B, -1), x2.reshape(B, -1), x3.reshape(B, -1), x4.reshape(B, -1)],
        axis=0,
    ).astype(jnp.bfloat16)

    # Rotation matrices flattened to (4B, 9): lane 3*i + c = R[row, i, c].
    R = jnp.concatenate(
        [r1.reshape(B, 9), r2.reshape(B, 9), r3.reshape(B, 9), r4.reshape(B, 9)],
        axis=0,
    ).astype(jnp.float32)

    # Pre-normalised fusion weights, zero-padded to the plane width.
    sv = v1 + v2 + v3 + v4
    Vn = jnp.concatenate([v1 / sv, v2 / sv, v3 / sv, v4 / sv], axis=0)
    Vn = jnp.pad(Vn.astype(jnp.float32), ((0, 0), (0, PJ - J)))          # (4B, PJ)

    # --- Pallas hot path: MLP + rotation + multi-view fusion ---
    o = mlp_pallas(X, fw["w1"], fw["b1"], fw["wh"], fw["bh"],
                   fw["w6"], fw["b6"], R, Vn)                            # (B, 3*PJ)

    # out[b, j, i] = o[b, i*PJ + j]
    return o.reshape(B, 3, PJ)[:, :, :J].transpose(0, 2, 1)              # (B, J, 3)


# ----------------------------------------------------------------------------
# Pure-JAX f32 reference (for validating the bf16 Pallas path).
# ----------------------------------------------------------------------------
def _reference_forward(params, xs, mean, sd, rs, vs):
    def folded(name):
        w, b = params[name]
        g, be, rm, rv = params["bn_" + name]
        return _fold_bn(w, b, g, be, rm, rv)

    hidden = ["fc2", "fc3", "fc4", "fc5", "fc7", "fc8", "fc9", "fc10"]
    outs = []
    for x, r in zip(xs, rs):
        h = x.reshape(x.shape[0], -1)
        w, b = folded("fc1")
        h = jnp.maximum(h @ w + b, 0.0)
        for blk in range(4):
            xin = h
            for name in hidden[2 * blk: 2 * blk + 2]:
                w, b = folded(name)
                h = jnp.maximum(h @ w + b, 0.0)
            h = h + xin
        w6, b6 = params["fc6"]
        y = (h @ w6 + b6).reshape(x.shape[0], -1, 3) * sd[None] + mean[None]
        outs.append(jnp.einsum("bij,bkj->bki", r, y))
    sv = vs[0] + vs[1] + vs[2] + vs[3]
    return sum((v / sv)[..., None] * o for v, o in zip(vs, outs))


# ----------------------------------------------------------------------------
if __name__ == "__main__":
    B = 2      # batch
    J = 16     # num_joints
    L = 256    # linear_size

    key = jax.random.PRNGKey(0)
    kp, kx, kr, kv, km = jax.random.split(key, 5)
    params = init_params(kp, L, J)

    kxs = jax.random.split(kx, 4)
    xs = [jax.random.normal(k, (B, J, 2), jnp.float32) for k in kxs]

    krs = jax.random.split(kr, 4)
    rs = [jax.random.normal(k, (B, 3, 3), jnp.float32) for k in krs]

    kvs = jax.random.split(kv, 4)
    vs = [jax.random.uniform(k, (B, J), jnp.float32, 0.1, 1.0) for k in kvs]

    km1, km2 = jax.random.split(km)
    mean = jax.random.normal(km1, (J, 3), jnp.float32)
    sd = jax.random.uniform(km2, (J, 3), jnp.float32, 0.5, 1.5)

    # One-time weight preparation (BN fold + denorm fold + bf16 + fc6 re-layout).
    fw = jax.tree_util.tree_map(jax.block_until_ready, prepare_weights(params, mean, sd))

    out = linear_model_forward(
        fw, xs[0], xs[1], xs[2], xs[3],
        rs[0], rs[1], rs[2], rs[3], vs[0], vs[1], vs[2], vs[3],
    )
    out = jax.block_until_ready(out)
    assert out.shape == (B, J, 3) and out.dtype == jnp.float32

    # Validate bf16 Pallas path against the pure-JAX f32 reference.
    ref = _reference_forward(params, xs, mean, sd, rs, vs)
    max_err = float(jnp.max(jnp.abs(out - ref)))
    assert max_err < 5e-2, f"max abs error vs f32 reference: {max_err}"

    print("KERNEL_OK")
</pallas_src>

<mosaic_0001>
module attributes {stable_mosaic.version = 11 : i64} {
  func.func @_mlp_kernel(%arg0: memref<8x32xbf16, #tpu.memory_space<vmem>>, %arg1: memref<32x256xbf16, #tpu.memory_space<vmem>>, %arg2: memref<1x256xf32, #tpu.memory_space<vmem>>, %arg3: memref<8x256x256xbf16, #tpu.memory_space<any>>, %arg4: memref<8x256xf32, #tpu.memory_space<vmem>>, %arg5: memref<256x384xbf16, #tpu.memory_space<vmem>>, %arg6: memref<1x384xf32, #tpu.memory_space<vmem>>, %arg7: memref<8x9xf32, #tpu.memory_space<vmem>>, %arg8: memref<8x128xf32, #tpu.memory_space<vmem>>, %arg9: memref<2x384xf32, #tpu.memory_space<vmem>>, %arg10: memref<2x256x256xbf16, #tpu.memory_space<vmem>>, %arg11: memref<2x!tpu.dma_semaphore, #tpu.memory_space<semaphore_mem>>) attributes {dimension_semantics = [], scalar_prefetch = 0 : i64, scratch_operands = 2 : i64, tpu.core_type = #tpu.core_type<tc>} {
    %c0_i32 = arith.constant 0 : i32
    %c0_i32_0 = arith.constant 0 : i32
    %c0_i32_1 = arith.constant 0 : i32
    %c0_i32_2 = arith.constant 0 : i32
    %c0_i32_3 = arith.constant 0 : i32
    %0 = tpu.memref_slice %arg3[%c0_i32, %c0_i32_2, %c0_i32_3] : memref<8x256x256xbf16, #tpu.memory_space<any>> -> memref<1x256x256xbf16, #tpu.memory_space<any>>
    %1 = tpu.memref_squeeze %0 : memref<1x256x256xbf16, #tpu.memory_space<any>> -> memref<256x256xbf16, #tpu.memory_space<any>>
    %c0_i32_4 = arith.constant 0 : i32
    %c0_i32_5 = arith.constant 0 : i32
    %2 = tpu.memref_slice %arg10[%c0_i32_0, %c0_i32_4, %c0_i32_5] : memref<2x256x256xbf16, #tpu.memory_space<vmem>> -> memref<1x256x256xbf16, #tpu.memory_space<vmem>>
    %3 = tpu.memref_squeeze %2 : memref<1x256x256xbf16, #tpu.memory_space<vmem>> -> memref<256x256xbf16, #tpu.memory_space<vmem>>
    %4 = tpu.memref_slice %arg11[%c0_i32_1] : memref<2x!tpu.dma_semaphore, #tpu.memory_space<semaphore_mem>> -> memref<1x!tpu.dma_semaphore, #tpu.memory_space<semaphore_mem>>
    %5 = tpu.memref_squeeze %4 : memref<1x!tpu.dma_semaphore, #tpu.memory_space<semaphore_mem>> -> memref<!tpu.dma_semaphore, #tpu.memory_space<semaphore_mem>>
    tpu.enqueue_dma source(%1 : memref<256x256xbf16, #tpu.memory_space<any>>) target(%3 : memref<256x256xbf16, #tpu.memory_space<vmem>>) target_semaphore(%5 : memref<!tpu.dma_semaphore, #tpu.memory_space<semaphore_mem>>)
    %c0 = arith.constant 0 : index
    %c0_6 = arith.constant 0 : index
    %6 = vector.load %arg0[%c0, %c0_6] : memref<8x32xbf16, #tpu.memory_space<vmem>>, vector<8x32xbf16>
    %c0_7 = arith.constant 0 : index
    %c0_8 = arith.constant 0 : index
    %7 = vector.load %arg1[%c0_7, %c0_8] : memref<32x256xbf16, #tpu.memory_space<vmem>>, vector<32x256xbf16>
    %cst = arith.constant dense<0.000000e+00> : vector<8x256xf32>
    %8 = tpu.matmul %6, %7, %cst {dimension_numbers = #tpu.dot_dimension_numbers<[1], [0], [0], [1], [0, 0, 1, 1], [], []>} : vector<8x32xbf16>, vector<32x256xbf16>, vector<8x256xf32> -> vector<8x256xf32>
    %c0_9 = arith.constant 0 : index
    %c0_10 = arith.constant 0 : index
    %9 = vector.load %arg2[%c0_9, %c0_10] : memref<1x256xf32, #tpu.memory_space<vmem>>, vector<1x256xf32>
    %10 = vector.broadcast %9 : vector<1x256xf32> to vector<8x256xf32>
    %11 = arith.addf %8, %10 : vector<8x256xf32>
    %cst_11 = arith.constant 0.000000e+00 : f32
    %12 = vector.broadcast %cst_11 : f32 to vector<8x256xf32>
    %13 = arith.maximumf %11, %12 : vector<8x256xf32>
    %c0_i32_12 = arith.constant 0 : i32
    %c0_i32_13 = arith.constant 0 : i32
    %c0_i32_14 = arith.constant 0 : i32
    %c0_i32_15 = arith.constant 0 : i32
    %c0_i32_16 = arith.constant 0 : i32
    %14 = tpu.memref_slice %arg3[%c0_i32_12, %c0_i32_15, %c0_i32_16] : memref<8x256x256xbf16, #tpu.memory_space<any>> -> memref<1x256x256xbf16, #tpu.memory_space<any>>
    %15 = tpu.memref_squeeze %14 : memref<1x256x256xbf16, #tpu.memory_space<any>> -> memref<256x256xbf16, #tpu.memory_space<any>>
    %c0_i32_17 = arith.constant 0 : i32
    %c0_i32_18 = arith.constant 0 : i32
    %16 = tpu.memref_slice %arg10[%c0_i32_13, %c0_i32_17, %c0_i32_18] : memref<2x256x256xbf16, #tpu.memory_space<vmem>> -> memref<1x256x256xbf16, #tpu.memory_space<vmem>>
    %17 = tpu.memref_squeeze %16 : memref<1x256x256xbf16, #tpu.memory_space<vmem>> -> memref<256x256xbf16, #tpu.memory_space<vmem>>
    %18 = tpu.memref_slice %arg11[%c0_i32_14] : memref<2x!tpu.dma_semaphore, #tpu.memory_space<semaphore_mem>> -> memref<1x!tpu.dma_semaphore, #tpu.memory_space<semaphore_mem>>
    %19 = tpu.memref_squeeze %18 : memref<1x!tpu.dma_semaphore, #tpu.memory_space<semaphore_mem>> -> memref<!tpu.dma_semaphore, #tpu.memory_space<semaphore_mem>>
    tpu.wait_dma2 semaphore(%19 : memref<!tpu.dma_semaphore, #tpu.memory_space<semaphore_mem>>) src(%15 : memref<256x256xbf16, #tpu.memory_space<any>>) dst(%17 : memref<256x256xbf16, #tpu.memory_space<vmem>>)
    %c1_i32 = arith.constant 1 : i32
    %c1_i32_19 = arith.constant 1 : i32
    %c1_i32_20 = arith.constant 1 : i32
    %c0_i32_21 = arith.constant 0 : i32
    %c0_i32_22 = arith.constant 0 : i32
    %20 = tpu.memref_slice %arg3[%c1_i32, %c0_i32_21, %c0_i32_22] : memref<8x256x256xbf16, #tpu.memory_space<any>> -> memref<1x256x256xbf16, #tpu.memory_space<any>>
    %21 = tpu.memref_squeeze %20 : memref<1x256x256xbf16, #tpu.memory_space<any>> -> memref<256x256xbf16, #tpu.memory_space<any>>
    %c0_i32_23 = arith.constant 0 : i32
    %c0_i32_24 = arith.constant 0 : i32
    %22 = tpu.memref_slice %arg10[%c1_i32_19, %c0_i32_23, %c0_i32_24] : memref<2x256x256xbf16, #tpu.memory_space<vmem>> -> memref<1x256x256xbf16, #tpu.memory_space<vmem>>
    %23 = tpu.memref_squeeze %22 : memref<1x256x256xbf16, #tpu.memory_space<vmem>> -> memref<256x256xbf16, #tpu.memory_space<vmem>>
    %24 = tpu.memref_slice %arg11[%c1_i32_20] : memref<2x!tpu.dma_semaphore, #tpu.memory_space<semaphore_mem>> -> memref<1x!tpu.dma_semaphore, #tpu.memory_space<semaphore_mem>>
    %25 = tpu.memref_squeeze %24 : memref<1x!tpu.dma_semaphore, #tpu.memory_space<semaphore_mem>> -> memref<!tpu.dma_semaphore, #tpu.memory_space<semaphore_mem>>
    tpu.enqueue_dma source(%21 : memref<256x256xbf16, #tpu.memory_space<any>>) target(%23 : memref<256x256xbf16, #tpu.memory_space<vmem>>) target_semaphore(%25 : memref<!tpu.dma_semaphore, #tpu.memory_space<semaphore_mem>>)
    %26 = arith.truncf %13 : vector<8x256xf32> to vector<8x256xbf16>
    %c0_25 = arith.constant 0 : index
    %c0_26 = arith.constant 0 : index
    %c0_27 = arith.constant 0 : index
    %27 = vector.load %arg10[%c0_25, %c0_26, %c0_27] : memref<2x256x256xbf16, #tpu.memory_space<vmem>>, vector<1x256x256xbf16>
    %28 = vector.shape_cast %27 : vector<1x256x256xbf16> to vector<256x256xbf16>
    %cst_28 = arith.constant dense<0.000000e+00> : vector<8x256xf32>
    %29 = tpu.matmul %26, %28, %cst_28 {dimension_numbers = #tpu.dot_dimension_numbers<[1], [0], [0], [1], [0, 0, 1, 1], [], []>} : vector<8x256xbf16>, vector<256x256xbf16>, vector<8x256xf32> -> vector<8x256xf32>
    %c0_29 = arith.constant 0 : index
    %c0_30 = arith.constant 0 : index
    %30 = vector.load %arg4[%c0_29, %c0_30] : memref<8x256xf32, #tpu.memory_space<vmem>>, vector<1x256xf32>
    %31 = vector.broadcast %30 : vector<1x256xf32> to vector<8x256xf32>
    %32 = arith.addf %29, %31 : vector<8x256xf32>
    %cst_31 = arith.constant 0.000000e+00 : f32
    %33 = vector.broadcast %cst_31 : f32 to vector<8x256xf32>
    %34 = arith.maximumf %32, %33 : vector<8x256xf32>
    %c1_i32_32 = arith.constant 1 : i32
    %c1_i32_33 = arith.constant 1 : i32
    %c1_i32_34 = arith.constant 1 : i32
    %c0_i32_35 = arith.constant 0 : i32
    %c0_i32_36 = arith.constant 0 : i32
    %35 = tpu.memref_slice %arg3[%c1_i32_32, %c0_i32_35, %c0_i32_36] : memref<8x256x256xbf16, #tpu.memory_space<any>> -> memref<1x256x256xbf16, #tpu.memory_space<any>>
    %36 = tpu.memref_squeeze %35 : memref<1x256x256xbf16, #tpu.memory_space<any>> -> memref<256x256xbf16, #tpu.memory_space<any>>
    %c0_i32_37 = arith.constant 0 : i32
    %c0_i32_38 = arith.constant 0 : i32
    %37 = tpu.memref_slice %arg10[%c1_i32_33, %c0_i32_37, %c0_i32_38] : memref<2x256x256xbf16, #tpu.memory_space<vmem>> -> memref<1x256x256xbf16, #tpu.memory_space<vmem>>
    %38 = tpu.memref_squeeze %37 : memref<1x256x256xbf16, #tpu.memory_space<vmem>> -> memref<256x256xbf16, #tpu.memory_space<vmem>>
    %39 = tpu.memref_slice %arg11[%c1_i32_34] : memref<2x!tpu.dma_semaphore, #tpu.memory_space<semaphore_mem>> -> memref<1x!tpu.dma_semaphore, #tpu.memory_space<semaphore_mem>>
    %40 = tpu.memref_squeeze %39 : memref<1x!tpu.dma_semaphore, #tpu.memory_space<semaphore_mem>> -> memref<!tpu.dma_semaphore, #tpu.memory_space<semaphore_mem>>
    tpu.wait_dma2 semaphore(%40 : memref<!tpu.dma_semaphore, #tpu.memory_space<semaphore_mem>>) src(%36 : memref<256x256xbf16, #tpu.memory_space<any>>) dst(%38 : memref<256x256xbf16, #tpu.memory_space<vmem>>)
    %c2_i32 = arith.constant 2 : i32
    %c0_i32_39 = arith.constant 0 : i32
    %c0_i32_40 = arith.constant 0 : i32
    %c0_i32_41 = arith.constant 0 : i32
    %c0_i32_42 = arith.constant 0 : i32
    %41 = tpu.memref_slice %arg3[%c2_i32, %c0_i32_41, %c0_i32_42] : memref<8x256x256xbf16, #tpu.memory_space<any>> -> memref<1x256x256xbf16, #tpu.memory_space<any>>
    %42 = tpu.memref_squeeze %41 : memref<1x256x256xbf16, #tpu.memory_space<any>> -> memref<256x256xbf16, #tpu.memory_space<any>>
    %c0_i32_43 = arith.constant 0 : i32
    %c0_i32_44 = arith.constant 0 : i32
    %43 = tpu.memref_slice %arg10[%c0_i32_39, %c0_i32_43, %c0_i32_44] : memref<2x256x256xbf16, #tpu.memory_space<vmem>> -> memref<1x256x256xbf16, #tpu.memory_space<vmem>>
    %44 = tpu.memref_squeeze %43 : memref<1x256x256xbf16, #tpu.memory_space<vmem>> -> memref<256x256xbf16, #tpu.memory_space<vmem>>
    %45 = tpu.memref_slice %arg11[%c0_i32_40] : memref<2x!tpu.dma_semaphore, #tpu.memory_space<semaphore_mem>> -> memref<1x!tpu.dma_semaphore, #tpu.memory_space<semaphore_mem>>
    %46 = tpu.memref_squeeze %45 : memref<1x!tpu.dma_semaphore, #tpu.memory_space<semaphore_mem>> -> memref<!tpu.dma_semaphore, #tpu.memory_space<semaphore_mem>>
    tpu.enqueue_dma source(%42 : memref<256x256xbf16, #tpu.memory_space<any>>) target(%44 : memref<256x256xbf16, #tpu.memory_space<vmem>>) target_semaphore(%46 : memref<!tpu.dma_semaphore, #tpu.memory_space<semaphore_mem>>)
    %47 = arith.truncf %34 : vector<8x256xf32> to vector<8x256xbf16>
    %c1 = arith.constant 1 : index
    %c0_45 = arith.constant 0 : index
    %c0_46 = arith.constant 0 : index
    %48 = vector.load %arg10[%c1, %c0_45, %c0_46] : memref<2x256x256xbf16, #tpu.memory_space<vmem>>, vector<1x256x256xbf16>
    %49 = vector.shape_cast %48 : vector<1x256x256xbf16> to vector<256x256xbf16>
    %cst_47 = arith.constant dense<0.000000e+00> : vector<8x256xf32>
    %50 = tpu.matmul %47, %49, %cst_47 {dimension_numbers = #tpu.dot_dimension_numbers<[1], [0], [0], [1], [0, 0, 1, 1], [], []>} : vector<8x256xbf16>, vector<256x256xbf16>, vector<8x256xf32> -> vector<8x256xf32>
    %c1_48 = arith.constant 1 : index
    %c0_49 = arith.constant 0 : index
    %51 = vector.load %arg4[%c1_48, %c0_49] : memref<8x256xf32, #tpu.memory_space<vmem>>, vector<1x256xf32>
    %52 = vector.broadcast %51 : vector<1x256xf32> to vector<8x256xf32>
    %53 = arith.addf %50, %52 : vector<8x256xf32>
    %cst_50 = arith.constant 0.000000e+00 : f32
    %54 = vector.broadcast %cst_50 : f32 to vector<8x256xf32>
    %55 = arith.maximumf %53, %54 : vector<8x256xf32>
    %56 = arith.addf %55, %13 : vector<8x256xf32>
    %c2_i32_51 = arith.constant 2 : i32
    %c0_i32_52 = arith.constant 0 : i32
    %c0_i32_53 = arith.constant 0 : i32
    %c0_i32_54 = arith.constant 0 : i32
    %c0_i32_55 = arith.constant 0 : i32
    %57 = tpu.memref_slice %arg3[%c2_i32_51, %c0_i32_54, %c0_i32_55] : memref<8x256x256xbf16, #tpu.memory_space<any>> -> memref<1x256x256xbf16, #tpu.memory_space<any>>
    %58 = tpu.memref_squeeze %57 : memref<1x256x256xbf16, #tpu.memory_space<any>> -> memref<256x256xbf16, #tpu.memory_space<any>>
    %c0_i32_56 = arith.constant 0 : i32
    %c0_i32_57 = arith.constant 0 : i32
    %59 = tpu.memref_slice %arg10[%c0_i32_52, %c0_i32_56, %c0_i32_57] : memref<2x256x256xbf16, #tpu.memory_space<vmem>> -> memref<1x256x256xbf16, #tpu.memory_space<vmem>>
    %60 = tpu.memref_squeeze %59 : memref<1x256x256xbf16, #tpu.memory_space<vmem>> -> memref<256x256xbf16, #tpu.memory_space<vmem>>
    %61 = tpu.memref_slice %arg11[%c0_i32_53] : memref<2x!tpu.dma_semaphore, #tpu.memory_space<semaphore_mem>> -> memref<1x!tpu.dma_semaphore, #tpu.memory_space<semaphore_mem>>
    %62 = tpu.memref_squeeze %61 : memref<1x!tpu.dma_semaphore, #tpu.memory_space<semaphore_mem>> -> memref<!tpu.dma_semaphore, #tpu.memory_space<semaphore_mem>>
    tpu.wait_dma2 semaphore(%62 : memref<!tpu.dma_semaphore, #tpu.memory_space<semaphore_mem>>) src(%58 : memref<256x256xbf16, #tpu.memory_space<any>>) dst(%60 : memref<256x256xbf16, #tpu.memory_space<vmem>>)
    %c3_i32 = arith.constant 3 : i32
    %c1_i32_58 = arith.constant 1 : i32
    %c1_i32_59 = arith.constant 1 : i32
    %c0_i32_60 = arith.constant 0 : i32
    %c0_i32_61 = arith.constant 0 : i32
    %63 = tpu.memref_slice %arg3[%c3_i32, %c0_i32_60, %c0_i32_61] : memref<8x256x256xbf16, #tpu.memory_space<any>> -> memref<1x256x256xbf16, #tpu.memory_space<any>>
    %64 = tpu.memref_squeeze %63 : memref<1x256x256xbf16, #tpu.memory_space<any>> -> memref<256x256xbf16, #tpu.memory_space<any>>
    %c0_i32_62 = arith.constant 0 : i32
    %c0_i32_63 = arith.constant 0 : i32
    %65 = tpu.memref_slice %arg10[%c1_i32_58, %c0_i32_62, %c0_i32_63] : memref<2x256x256xbf16, #tpu.memory_space<vmem>> -> memref<1x256x256xbf16, #tpu.memory_space<vmem>>
    %66 = tpu.memref_squeeze %65 : memref<1x256x256xbf16, #tpu.memory_space<vmem>> -> memref<256x256xbf16, #tpu.memory_space<vmem>>
    %67 = tpu.memref_slice %arg11[%c1_i32_59] : memref<2x!tpu.dma_semaphore, #tpu.memory_space<semaphore_mem>> -> memref<1x!tpu.dma_semaphore, #tpu.memory_space<semaphore_mem>>
    %68 = tpu.memref_squeeze %67 : memref<1x!tpu.dma_semaphore, #tpu.memory_space<semaphore_mem>> -> memref<!tpu.dma_semaphore, #tpu.memory_space<semaphore_mem>>
    tpu.enqueue_dma source(%64 : memref<256x256xbf16, #tpu.memory_space<any>>) target(%66 : memref<256x256xbf16, #tpu.memory_space<vmem>>) target_semaphore(%68 : memref<!tpu.dma_semaphore, #tpu.memory_space<semaphore_mem>>)
    %69 = arith.truncf %56 : vector<8x256xf32> to vector<8x256xbf16>
    %c0_64 = arith.constant 0 : index
    %c0_65 = arith.constant 0 : index
    %c0_66 = arith.constant 0 : index
    %70 = vector.load %arg10[%c0_64, %c0_65, %c0_66] : memref<2x256x256xbf16, #tpu.memory_space<vmem>>, vector<1x256x256xbf16>
    %71 = vector.shape_cast %70 : vector<1x256x256xbf16> to vector<256x256xbf16>
    %cst_67 = arith.constant dense<0.000000e+00> : vector<8x256xf32>
    %72 = tpu.matmul %69, %71, %cst_67 {dimension_numbers = #tpu.dot_dimension_numbers<[1], [0], [0], [1], [0, 0, 1, 1], [], []>} : vector<8x256xbf16>, vector<256x256xbf16>, vector<8x256xf32> -> vector<8x256xf32>
    %c2 = arith.constant 2 : index
    %c0_68 = arith.constant 0 : index
    %73 = vector.load %arg4[%c2, %c0_68] : memref<8x256xf32, #tpu.memory_space<vmem>>, vector<1x256xf32>
    %74 = vector.broadcast %73 : vector<1x256xf32> to vector<8x256xf32>
    %75 = arith.addf %72, %74 : vector<8x256xf32>
    %cst_69 = arith.constant 0.000000e+00 : f32
    %76 = vector.broadcast %cst_69 : f32 to vector<8x256xf32>
    %77 = arith.maximumf %75, %76 : vector<8x256xf32>
    %c3_i32_70 = arith.constant 3 : i32
    %c1_i32_71 = arith.constant 1 : i32
    %c1_i32_72 = arith.constant 1 : i32
    %c0_i32_73 = arith.constant 0 : i32
    %c0_i32_74 = arith.constant 0 : i32
    %78 = tpu.memref_slice %arg3[%c3_i32_70, %c0_i32_73, %c0_i32_74] : memref<8x256x256xbf16, #tpu.memory_space<any>> -> memref<1x256x256xbf16, #tpu.memory_space<any>>
    %79 = tpu.memref_squeeze %78 : memref<1x256x256xbf16, #tpu.memory_space<any>> -> memref<256x256xbf16, #tpu.memory_space<any>>
    %c0_i32_75 = arith.constant 0 : i32
    %c0_i32_76 = arith.constant 0 : i32
    %80 = tpu.memref_slice %arg10[%c1_i32_71, %c0_i32_75, %c0_i32_76] : memref<2x256x256xbf16, #tpu.memory_space<vmem>> -> memref<1x256x256xbf16, #tpu.memory_space<vmem>>
    %81 = tpu.memref_squeeze %80 : memref<1x256x256xbf16, #tpu.memory_space<vmem>> -> memref<256x256xbf16, #tpu.memory_space<vmem>>
    %82 = tpu.memref_slice %arg11[%c1_i32_72] : memref<2x!tpu.dma_semaphore, #tpu.memory_space<semaphore_mem>> -> memref<1x!tpu.dma_semaphore, #tpu.memory_space<semaphore_mem>>
    %83 = tpu.memref_squeeze %82 : memref<1x!tpu.dma_semaphore, #tpu.memory_space<semaphore_mem>> -> memref<!tpu.dma_semaphore, #tpu.memory_space<semaphore_mem>>
    tpu.wait_dma2 semaphore(%83 : memref<!tpu.dma_semaphore, #tpu.memory_space<semaphore_mem>>) src(%79 : memref<256x256xbf16, #tpu.memory_space<any>>) dst(%81 : memref<256x256xbf16, #tpu.memory_space<vmem>>)
    %c4_i32 = arith.constant 4 : i32
    %c0_i32_77 = arith.constant 0 : i32
    %c0_i32_78 = arith.constant 0 : i32
    %c0_i32_79 = arith.constant 0 : i32
    %c0_i32_80 = arith.constant 0 : i32
    %84 = tpu.memref_slice %arg3[%c4_i32, %c0_i32_79, %c0_i32_80] : memref<8x256x256xbf16, #tpu.memory_space<any>> -> memref<1x256x256xbf16, #tpu.memory_space<any>>
    %85 = tpu.memref_squeeze %84 : memref<1x256x256xbf16, #tpu.memory_space<any>> -> memref<256x256xbf16, #tpu.memory_space<any>>
    %c0_i32_81 = arith.constant 0 : i32
    %c0_i32_82 = arith.constant 0 : i32
    %86 = tpu.memref_slice %arg10[%c0_i32_77, %c0_i32_81, %c0_i32_82] : memref<2x256x256xbf16, #tpu.memory_space<vmem>> -> memref<1x256x256xbf16, #tpu.memory_space<vmem>>
    %87 = tpu.memref_squeeze %86 : memref<1x256x256xbf16, #tpu.memory_space<vmem>> -> memref<256x256xbf16, #tpu.memory_space<vmem>>
    %88 = tpu.memref_slice %arg11[%c0_i32_78] : memref<2x!tpu.dma_semaphore, #tpu.memory_space<semaphore_mem>> -> memref<1x!tpu.dma_semaphore, #tpu.memory_space<semaphore_mem>>
    %89 = tpu.memref_squeeze %88 : memref<1x!tpu.dma_semaphore, #tpu.memory_space<semaphore_mem>> -> memref<!tpu.dma_semaphore, #tpu.memory_space<semaphore_mem>>
    tpu.enqueue_dma source(%85 : memref<256x256xbf16, #tpu.memory_space<any>>) target(%87 : memref<256x256xbf16, #tpu.memory_space<vmem>>) target_semaphore(%89 : memref<!tpu.dma_semaphore, #tpu.memory_space<semaphore_mem>>)
    %90 = arith.truncf %77 : vector<8x256xf32> to vector<8x256xbf16>
    %c1_83 = arith.constant 1 : index
    %c0_84 = arith.constant 0 : index
    %c0_85 = arith.constant 0 : index
    %91 = vector.load %arg10[%c1_83, %c0_84, %c0_85] : memref<2x256x256xbf16, #tpu.memory_space<vmem>>, vector<1x256x256xbf16>
    %92 = vector.shape_cast %91 : vector<1x256x256xbf16> to vector<256x256xbf16>
    %cst_86 = arith.constant dense<0.000000e+00> : vector<8x256xf32>
    %93 = tpu.matmul %90, %92, %cst_86 {dimension_numbers = #tpu.dot_dimension_numbers<[1], [0], [0], [1], [0, 0, 1, 1], [], []>} : vector<8x256xbf16>, vector<256x256xbf16>, vector<8x256xf32> -> vector<8x256xf32>
    %c3 = arith.constant 3 : index
    %c0_87 = arith.constant 0 : index
    %94 = vector.load %arg4[%c3, %c0_87] : memref<8x256xf32, #tpu.memory_space<vmem>>, vector<1x256xf32>
    %95 = vector.broadcast %94 : vector<1x256xf32> to vector<8x256xf32>
    %96 = arith.addf %93, %95 : vector<8x256xf32>
    %cst_88 = arith.constant 0.000000e+00 : f32
    %97 = vector.broadcast %cst_88 : f32 to vector<8x256xf32>
    %98 = arith.maximumf %96, %97 : vector<8x256xf32>
    %99 = arith.addf %98, %56 : vector<8x256xf32>
    %c4_i32_89 = arith.constant 4 : i32
    %c0_i32_90 = arith.constant 0 : i32
    %c0_i32_91 = arith.constant 0 : i32
    %c0_i32_92 = arith.constant 0 : i32
    %c0_i32_93 = arith.constant 0 : i32
    %100 = tpu.memref_slice %arg3[%c4_i32_89, %c0_i32_92, %c0_i32_93] : memref<8x256x256xbf16, #tpu.memory_space<any>> -> memref<1x256x256xbf16, #tpu.memory_space<any>>
    %101 = tpu.memref_squeeze %100 : memref<1x256x256xbf16, #tpu.memory_space<any>> -> memref<256x256xbf16, #tpu.memory_space<any>>
    %c0_i32_94 = arith.constant 0 : i32
    %c0_i32_95 = arith.constant 0 : i32
    %102 = tpu.memref_slice %arg10[%c0_i32_90, %c0_i32_94, %c0_i32_95] : memref<2x256x256xbf16, #tpu.memory_space<vmem>> -> memref<1x256x256xbf16, #tpu.memory_space<vmem>>
    %103 = tpu.memref_squeeze %102 : memref<1x256x256xbf16, #tpu.memory_space<vmem>> -> memref<256x256xbf16, #tpu.memory_space<vmem>>
    %104 = tpu.memref_slice %arg11[%c0_i32_91] : memref<2x!tpu.dma_semaphore, #tpu.memory_space<semaphore_mem>> -> memref<1x!tpu.dma_semaphore, #tpu.memory_space<semaphore_mem>>
    %105 = tpu.memref_squeeze %104 : memref<1x!tpu.dma_semaphore, #tpu.memory_space<semaphore_mem>> -> memref<!tpu.dma_semaphore, #tpu.memory_space<semaphore_mem>>
    tpu.wait_dma2 semaphore(%105 : memref<!tpu.dma_semaphore, #tpu.memory_space<semaphore_mem>>) src(%101 : memref<256x256xbf16, #tpu.memory_space<any>>) dst(%103 : memref<256x256xbf16, #tpu.memory_space<vmem>>)
    %c5_i32 = arith.constant 5 : i32
    %c1_i32_96 = arith.constant 1 : i32
    %c1_i32_97 = arith.constant 1 : i32
    %c0_i32_98 = arith.constant 0 : i32
    %c0_i32_99 = arith.constant 0 : i32
    %106 = tpu.memref_slice %arg3[%c5_i32, %c0_i32_98, %c0_i32_99] : memref<8x256x256xbf16, #tpu.memory_space<any>> -> memref<1x256x256xbf16, #tpu.memory_space<any>>
    %107 = tpu.memref_squeeze %106 : memref<1x256x256xbf16, #tpu.memory_space<any>> -> memref<256x256xbf16, #tpu.memory_space<any>>
    %c0_i32_100 = arith.constant 0 : i32
    %c0_i32_101 = arith.constant 0 : i32
    %108 = tpu.memref_slice %arg10[%c1_i32_96, %c0_i32_100, %c0_i32_101] : memref<2x256x256xbf16, #tpu.memory_space<vmem>> -> memref<1x256x256xbf16, #tpu.memory_space<vmem>>
    %109 = tpu.memref_squeeze %108 : memref<1x256x256xbf16, #tpu.memory_space<vmem>> -> memref<256x256xbf16, #tpu.memory_space<vmem>>
    %110 = tpu.memref_slice %arg11[%c1_i32_97] : memref<2x!tpu.dma_semaphore, #tpu.memory_space<semaphore_mem>> -> memref<1x!tpu.dma_semaphore, #tpu.memory_space<semaphore_mem>>
    %111 = tpu.memref_squeeze %110 : memref<1x!tpu.dma_semaphore, #tpu.memory_space<semaphore_mem>> -> memref<!tpu.dma_semaphore, #tpu.memory_space<semaphore_mem>>
    tpu.enqueue_dma source(%107 : memref<256x256xbf16, #tpu.memory_space<any>>) target(%109 : memref<256x256xbf16, #tpu.memory_space<vmem>>) target_semaphore(%111 : memref<!tpu.dma_semaphore, #tpu.memory_space<semaphore_mem>>)
    %112 = arith.truncf %99 : vector<8x256xf32> to vector<8x256xbf16>
    %c0_102 = arith.constant 0 : index
    %c0_103 = arith.constant 0 : index
    %c0_104 = arith.constant 0 : index
    %113 = vector.load %arg10[%c0_102, %c0_103, %c0_104] : memref<2x256x256xbf16, #tpu.memory_space<vmem>>, vector<1x256x256xbf16>
    %114 = vector.shape_cast %113 : vector<1x256x256xbf16> to vector<256x256xbf16>
    %cst_105 = arith.constant dense<0.000000e+00> : vector<8x256xf32>
    %115 = tpu.matmul %112, %114, %cst_105 {dimension_numbers = #tpu.dot_dimension_numbers<[1], [0], [0], [1], [0, 0, 1, 1], [], []>} : vector<8x256xbf16>, vector<256x256xbf16>, vector<8x256xf32> -> vector<8x256xf32>
    %c4 = arith.constant 4 : index
    %c0_106 = arith.constant 0 : index
    %116 = vector.load %arg4[%c4, %c0_106] : memref<8x256xf32, #tpu.memory_space<vmem>>, vector<1x256xf32>
    %117 = vector.broadcast %116 : vector<1x256xf32> to vector<8x256xf32>
    %118 = arith.addf %115, %117 : vector<8x256xf32>
    %cst_107 = arith.constant 0.000000e+00 : f32
    %119 = vector.broadcast %cst_107 : f32 to vector<8x256xf32>
    %120 = arith.maximumf %118, %119 : vector<8x256xf32>
    %c5_i32_108 = arith.constant 5 : i32
    %c1_i32_109 = arith.constant 1 : i32
    %c1_i32_110 = arith.constant 1 : i32
    %c0_i32_111 = arith.constant 0 : i32
    %c0_i32_112 = arith.constant 0 : i32
    %121 = tpu.memref_slice %arg3[%c5_i32_108, %c0_i32_111, %c0_i32_112] : memref<8x256x256xbf16, #tpu.memory_space<any>> -> memref<1x256x256xbf16, #tpu.memory_space<any>>
    %122 = tpu.memref_squeeze %121 : memref<1x256x256xbf16, #tpu.memory_space<any>> -> memref<256x256xbf16, #tpu.memory_space<any>>
    %c0_i32_113 = arith.constant 0 : i32
    %c0_i32_114 = arith.constant 0 : i32
    %123 = tpu.memref_slice %arg10[%c1_i32_109, %c0_i32_113, %c0_i32_114] : memref<2x256x256xbf16, #tpu.memory_space<vmem>> -> memref<1x256x256xbf16, #tpu.memory_space<vmem>>
    %124 = tpu.memref_squeeze %123 : memref<1x256x256xbf16, #tpu.memory_space<vmem>> -> memref<256x256xbf16, #tpu.memory_space<vmem>>
    %125 = tpu.memref_slice %arg11[%c1_i32_110] : memref<2x!tpu.dma_semaphore, #tpu.memory_space<semaphore_mem>> -> memref<1x!tpu.dma_semaphore, #tpu.memory_space<semaphore_mem>>
    %126 = tpu.memref_squeeze %125 : memref<1x!tpu.dma_semaphore, #tpu.memory_space<semaphore_mem>> -> memref<!tpu.dma_semaphore, #tpu.memory_space<semaphore_mem>>
    tpu.wait_dma2 semaphore(%126 : memref<!tpu.dma_semaphore, #tpu.memory_space<semaphore_mem>>) src(%122 : memref<256x256xbf16, #tpu.memory_space<any>>) dst(%124 : memref<256x256xbf16, #tpu.memory_space<vmem>>)
    %c6_i32 = arith.constant 6 : i32
    %c0_i32_115 = arith.constant 0 : i32
    %c0_i32_116 = arith.constant 0 : i32
    %c0_i32_117 = arith.constant 0 : i32
    %c0_i32_118 = arith.constant 0 : i32
    %127 = tpu.memref_slice %arg3[%c6_i32, %c0_i32_117, %c0_i32_118] : memref<8x256x256xbf16, #tpu.memory_space<any>> -> memref<1x256x256xbf16, #tpu.memory_space<any>>
    %128 = tpu.memref_squeeze %127 : memref<1x256x256xbf16, #tpu.memory_space<any>> -> memref<256x256xbf16, #tpu.memory_space<any>>
    %c0_i32_119 = arith.constant 0 : i32
    %c0_i32_120 = arith.constant 0 : i32
    %129 = tpu.memref_slice %arg10[%c0_i32_115, %c0_i32_119, %c0_i32_120] : memref<2x256x256xbf16, #tpu.memory_space<vmem>> -> memref<1x256x256xbf16, #tpu.memory_space<vmem>>
    %130 = tpu.memref_squeeze %129 : memref<1x256x256xbf16, #tpu.memory_space<vmem>> -> memref<256x256xbf16, #tpu.memory_space<vmem>>
    %131 = tpu.memref_slice %arg11[%c0_i32_116] : memref<2x!tpu.dma_semaphore, #tpu.memory_space<semaphore_mem>> -> memref<1x!tpu.dma_semaphore, #tpu.memory_space<semaphore_mem>>
    %132 = tpu.memref_squeeze %131 : memref<1x!tpu.dma_semaphore, #tpu.memory_space<semaphore_mem>> -> memref<!tpu.dma_semaphore, #tpu.memory_space<semaphore_mem>>
    tpu.enqueue_dma source(%128 : memref<256x256xbf16, #tpu.memory_space<any>>) target(%130 : memref<256x256xbf16, #tpu.memory_space<vmem>>) target_semaphore(%132 : memref<!tpu.dma_semaphore, #tpu.memory_space<semaphore_mem>>)
    %133 = arith.truncf %120 : vector<8x256xf32> to vector<8x256xbf16>
    %c1_121 = arith.constant 1 : index
    %c0_122 = arith.constant 0 : index
    %c0_123 = arith.constant 0 : index
    %134 = vector.load %arg10[%c1_121, %c0_122, %c0_123] : memref<2x256x256xbf16, #tpu.memory_space<vmem>>, vector<1x256x256xbf16>
    %135 = vector.shape_cast %134 : vector<1x256x256xbf16> to vector<256x256xbf16>
    %cst_124 = arith.constant dense<0.000000e+00> : vector<8x256xf32>
    %136 = tpu.matmul %133, %135, %cst_124 {dimension_numbers = #tpu.dot_dimension_numbers<[1], [0], [0], [1], [0, 0, 1, 1], [], []>} : vector<8x256xbf16>, vector<256x256xbf16>, vector<8x256xf32> -> vector<8x256xf32>
    %c5 = arith.constant 5 : index
    %c0_125 = arith.constant 0 : index
    %137 = vector.load %arg4[%c5, %c0_125] : memref<8x256xf32, #tpu.memory_space<vmem>>, vector<1x256xf32>
    %138 = vector.broadcast %137 : vector<1x256xf32> to vector<8x256xf32>
    %139 = arith.addf %136, %138 : vector<8x256xf32>
    %cst_126 = arith.constant 0.000000e+00 : f32
    %140 = vector.broadcast %cst_126 : f32 to vector<8x256xf32>
    %141 = arith.maximumf %139, %140 : vector<8x256xf32>
    %142 = arith.addf %141, %99 : vector<8x256xf32>
    %c6_i32_127 = arith.constant 6 : i32
    %c0_i32_128 = arith.constant 0 : i32
    %c0_i32_129 = arith.constant 0 : i32
    %c0_i32_130 = arith.constant 0 : i32
    %c0_i32_131 = arith.constant 0 : i32
    %143 = tpu.memref_slice %arg3[%c6_i32_127, %c0_i32_130, %c0_i32_131] : memref<8x256x256xbf16, #tpu.memory_space<any>> -> memref<1x256x256xbf16, #tpu.memory_space<any>>
    %144 = tpu.memref_squeeze %143 : memref<1x256x256xbf16, #tpu.memory_space<any>> -> memref<256x256xbf16, #tpu.memory_space<any>>
    %c0_i32_132 = arith.constant 0 : i32
    %c0_i32_133 = arith.constant 0 : i32
    %145 = tpu.memref_slice %arg10[%c0_i32_128, %c0_i32_132, %c0_i32_133] : memref<2x256x256xbf16, #tpu.memory_space<vmem>> -> memref<1x256x256xbf16, #tpu.memory_space<vmem>>
    %146 = tpu.memref_squeeze %145 : memref<1x256x256xbf16, #tpu.memory_space<vmem>> -> memref<256x256xbf16, #tpu.memory_space<vmem>>
    %147 = tpu.memref_slice %arg11[%c0_i32_129] : memref<2x!tpu.dma_semaphore, #tpu.memory_space<semaphore_mem>> -> memref<1x!tpu.dma_semaphore, #tpu.memory_space<semaphore_mem>>
    %148 = tpu.memref_squeeze %147 : memref<1x!tpu.dma_semaphore, #tpu.memory_space<semaphore_mem>> -> memref<!tpu.dma_semaphore, #tpu.memory_space<semaphore_mem>>
    tpu.wait_dma2 semaphore(%148 : memref<!tpu.dma_semaphore, #tpu.memory_space<semaphore_mem>>) src(%144 : memref<256x256xbf16, #tpu.memory_space<any>>) dst(%146 : memref<256x256xbf16, #tpu.memory_space<vmem>>)
    %c7_i32 = arith.constant 7 : i32
    %c1_i32_134 = arith.constant 1 : i32
    %c1_i32_135 = arith.constant 1 : i32
    %c0_i32_136 = arith.constant 0 : i32
    %c0_i32_137 = arith.constant 0 : i32
    %149 = tpu.memref_slice %arg3[%c7_i32, %c0_i32_136, %c0_i32_137] : memref<8x256x256xbf16, #tpu.memory_space<any>> -> memref<1x256x256xbf16, #tpu.memory_space<any>>
    %150 = tpu.memref_squeeze %149 : memref<1x256x256xbf16, #tpu.memory_space<any>> -> memref<256x256xbf16, #tpu.memory_space<any>>
    %c0_i32_138 = arith.constant 0 : i32
    %c0_i32_139 = arith.constant 0 : i32
    %151 = tpu.memref_slice %arg10[%c1_i32_134, %c0_i32_138, %c0_i32_139] : memref<2x256x256xbf16, #tpu.memory_space<vmem>> -> memref<1x256x256xbf16, #tpu.memory_space<vmem>>
    %152 = tpu.memref_squeeze %151 : memref<1x256x256xbf16, #tpu.memory_space<vmem>> -> memref<256x256xbf16, #tpu.memory_space<vmem>>
    %153 = tpu.memref_slice %arg11[%c1_i32_135] : memref<2x!tpu.dma_semaphore, #tpu.memory_space<semaphore_mem>> -> memref<1x!tpu.dma_semaphore, #tpu.memory_space<semaphore_mem>>
    %154 = tpu.memref_squeeze %153 : memref<1x!tpu.dma_semaphore, #tpu.memory_space<semaphore_mem>> -> memref<!tpu.dma_semaphore, #tpu.memory_space<semaphore_mem>>
    tpu.enqueue_dma source(%150 : memref<256x256xbf16, #tpu.memory_space<any>>) target(%152 : memref<256x256xbf16, #tpu.memory_space<vmem>>) target_semaphore(%154 : memref<!tpu.dma_semaphore, #tpu.memory_space<semaphore_mem>>)
    %155 = arith.truncf %142 : vector<8x256xf32> to vector<8x256xbf16>
    %c0_140 = arith.constant 0 : index
    %c0_141 = arith.constant 0 : index
    %c0_142 = arith.constant 0 : index
    %156 = vector.load %arg10[%c0_140, %c0_141, %c0_142] : memref<2x256x256xbf16, #tpu.memory_space<vmem>>, vector<1x256x256xbf16>
    %157 = vector.shape_cast %156 : vector<1x256x256xbf16> to vector<256x256xbf16>
    %cst_143 = arith.constant dense<0.000000e+00> : vector<8x256xf32>
    %158 = tpu.matmul %155, %157, %cst_143 {dimension_numbers = #tpu.dot_dimension_numbers<[1], [0], [0], [1], [0, 0, 1, 1], [], []>} : vector<8x256xbf16>, vector<256x256xbf16>, vector<8x256xf32> -> vector<8x256xf32>
    %c6 = arith.constant 6 : index
    %c0_144 = arith.constant 0 : index
    %159 = vector.load %arg4[%c6, %c0_144] : memref<8x256xf32, #tpu.memory_space<vmem>>, vector<1x256xf32>
    %160 = vector.broadcast %159 : vector<1x256xf32> to vector<8x256xf32>
    %161 = arith.addf %158, %160 : vector<8x256xf32>
    %cst_145 = arith.constant 0.000000e+00 : f32
    %162 = vector.broadcast %cst_145 : f32 to vector<8x256xf32>
    %163 = arith.maximumf %161, %162 : vector<8x256xf32>
    %c7_i32_146 = arith.constant 7 : i32
    %c1_i32_147 = arith.constant 1 : i32
    %c1_i32_148 = arith.constant 1 : i32
    %c0_i32_149 = arith.constant 0 : i32
    %c0_i32_150 = arith.constant 0 : i32
    %164 = tpu.memref_slice %arg3[%c7_i32_146, %c0_i32_149, %c0_i32_150] : memref<8x256x256xbf16, #tpu.memory_space<any>> -> memref<1x256x256xbf16, #tpu.memory_space<any>>
    %165 = tpu.memref_squeeze %164 : memref<1x256x256xbf16, #tpu.memory_space<any>> -> memref<256x256xbf16, #tpu.memory_space<any>>
    %c0_i32_151 = arith.constant 0 : i32
    %c0_i32_152 = arith.constant 0 : i32
    %166 = tpu.memref_slice %arg10[%c1_i32_147, %c0_i32_151, %c0_i32_152] : memref<2x256x256xbf16, #tpu.memory_space<vmem>> -> memref<1x256x256xbf16, #tpu.memory_space<vmem>>
    %167 = tpu.memref_squeeze %166 : memref<1x256x256xbf16, #tpu.memory_space<vmem>> -> memref<256x256xbf16, #tpu.memory_space<vmem>>
    %168 = tpu.memref_slice %arg11[%c1_i32_148] : memref<2x!tpu.dma_semaphore, #tpu.memory_space<semaphore_mem>> -> memref<1x!tpu.dma_semaphore, #tpu.memory_space<semaphore_mem>>
    %169 = tpu.memref_squeeze %168 : memref<1x!tpu.dma_semaphore, #tpu.memory_space<semaphore_mem>> -> memref<!tpu.dma_semaphore, #tpu.memory_space<semaphore_mem>>
    tpu.wait_dma2 semaphore(%169 : memref<!tpu.dma_semaphore, #tpu.memory_space<semaphore_mem>>) src(%165 : memref<256x256xbf16, #tpu.memory_space<any>>) dst(%167 : memref<256x256xbf16, #tpu.memory_space<vmem>>)
    %170 = arith.truncf %163 : vector<8x256xf32> to vector<8x256xbf16>
    %c1_153 = arith.constant 1 : index
    %c0_154 = arith.constant 0 : index
    %c0_155 = arith.constant 0 : index
    %171 = vector.load %arg10[%c1_153, %c0_154, %c0_155] : memref<2x256x256xbf16, #tpu.memory_space<vmem>>, vector<1x256x256xbf16>
    %172 = vector.shape_cast %171 : vector<1x256x256xbf16> to vector<256x256xbf16>
    %cst_156 = arith.constant dense<0.000000e+00> : vector<8x256xf32>
    %173 = tpu.matmul %170, %172, %cst_156 {dimension_numbers = #tpu.dot_dimension_numbers<[1], [0], [0], [1], [0, 0, 1, 1], [], []>} : vector<8x256xbf16>, vector<256x256xbf16>, vector<8x256xf32> -> vector<8x256xf32>
    %c7 = arith.constant 7 : index
    %c0_157 = arith.constant 0 : index
    %174 = vector.load %arg4[%c7, %c0_157] : memref<8x256xf32, #tpu.memory_space<vmem>>, vector<1x256xf32>
    %175 = vector.broadcast %174 : vector<1x256xf32> to vector<8x256xf32>
    %176 = arith.addf %173, %175 : vector<8x256xf32>
    %cst_158 = arith.constant 0.000000e+00 : f32
    %177 = vector.broadcast %cst_158 : f32 to vector<8x256xf32>
    %178 = arith.maximumf %176, %177 : vector<8x256xf32>
    %179 = arith.addf %178, %142 : vector<8x256xf32>
    %180 = arith.truncf %179 : vector<8x256xf32> to vector<8x256xbf16>
    %c0_159 = arith.constant 0 : index
    %c0_160 = arith.constant 0 : index
    %181 = vector.load %arg5[%c0_159, %c0_160] : memref<256x384xbf16, #tpu.memory_space<vmem>>, vector<256x384xbf16>
    %cst_161 = arith.constant dense<0.000000e+00> : vector<8x384xf32>
    %182 = tpu.matmul %180, %181, %cst_161 {dimension_numbers = #tpu.dot_dimension_numbers<[1], [0], [0], [1], [0, 0, 1, 1], [], []>} : vector<8x256xbf16>, vector<256x384xbf16>, vector<8x384xf32> -> vector<8x384xf32>
    %c0_162 = arith.constant 0 : index
    %c0_163 = arith.constant 0 : index
    %183 = vector.load %arg6[%c0_162, %c0_163] : memref<1x384xf32, #tpu.memory_space<vmem>>, vector<1x384xf32>
    %184 = vector.broadcast %183 : vector<1x384xf32> to vector<8x384xf32>
    %185 = arith.addf %182, %184 : vector<8x384xf32>
    %c0_164 = arith.constant 0 : index
    %c0_165 = arith.constant 0 : index
    %186 = vector.load %arg7[%c0_164, %c0_165] : memref<8x9xf32, #tpu.memory_space<vmem>>, vector<8x9xf32>
    %c0_166 = arith.constant 0 : index
    %c0_167 = arith.constant 0 : index
    %187 = vector.load %arg8[%c0_166, %c0_167] : memref<8x128xf32, #tpu.memory_space<vmem>>, vector<8x128xf32>
    %188 = vector.extract_strided_slice %185 {offsets = [0, 0], sizes = [8, 128], strides = [1, 1]} : vector<8x384xf32> to vector<8x128xf32>
    %189 = vector.extract_strided_slice %185 {offsets = [0, 128], sizes = [8, 128], strides = [1, 1]} : vector<8x384xf32> to vector<8x128xf32>
    %190 = vector.extract_strided_slice %185 {offsets = [0, 256], sizes = [8, 128], strides = [1, 1]} : vector<8x384xf32> to vector<8x128xf32>
    %191 = vector.extract_strided_slice %186 {offsets = [0, 0], sizes = [8, 1], strides = [1, 1]} : vector<8x9xf32> to vector<8x1xf32>
    %192 = vector.broadcast %191 : vector<8x1xf32> to vector<8x128xf32>
    %193 = arith.mulf %192, %188 : vector<8x128xf32>
    %194 = vector.extract_strided_slice %186 {offsets = [0, 1], sizes = [8, 1], strides = [1, 1]} : vector<8x9xf32> to vector<8x1xf32>
    %195 = vector.broadcast %194 : vector<8x1xf32> to vector<8x128xf32>
    %196 = arith.mulf %195, %189 : vector<8x128xf32>
    %197 = arith.addf %193, %196 : vector<8x128xf32>
    %198 = vector.extract_strided_slice %186 {offsets = [0, 2], sizes = [8, 1], strides = [1, 1]} : vector<8x9xf32> to vector<8x1xf32>
    %199 = vector.broadcast %198 : vector<8x1xf32> to vector<8x128xf32>
    %200 = arith.mulf %199, %190 : vector<8x128xf32>
    %201 = arith.addf %197, %200 : vector<8x128xf32>
    %202 = arith.mulf %201, %187 : vector<8x128xf32>
    %203 = vector.extract_strided_slice %202 {offsets = [0, 0], sizes = [2, 128], strides = [1, 1]} : vector<8x128xf32> to vector<2x128xf32>
    %204 = vector.extract_strided_slice %202 {offsets = [2, 0], sizes = [2, 128], strides = [1, 1]} : vector<8x128xf32> to vector<2x128xf32>
    %205 = arith.addf %203, %204 : vector<2x128xf32>
    %206 = vector.extract_strided_slice %202 {offsets = [4, 0], sizes = [2, 128], strides = [1, 1]} : vector<8x128xf32> to vector<2x128xf32>
    %207 = arith.addf %205, %206 : vector<2x128xf32>
    %208 = vector.extract_strided_slice %202 {offsets = [6, 0], sizes = [2, 128], strides = [1, 1]} : vector<8x128xf32> to vector<2x128xf32>
    %209 = arith.addf %207, %208 : vector<2x128xf32>
    %c0_168 = arith.constant 0 : index
    %c0_169 = arith.constant 0 : index
    %210 = vector.load %arg9[%c0_168, %c0_169] : memref<2x384xf32, #tpu.memory_space<vmem>>, vector<2x128xf32>
    tpu.vector_store %arg9[%c0_168, %c0_169], %209 {strides = array<i32>} : memref<2x384xf32, #tpu.memory_space<vmem>>, vector<2x128xf32>,
    %211 = vector.extract_strided_slice %186 {offsets = [0, 3], sizes = [8, 1], strides = [1, 1]} : vector<8x9xf32> to vector<8x1xf32>
    %212 = vector.broadcast %211 : vector<8x1xf32> to vector<8x128xf32>
    %213 = arith.mulf %212, %188 : vector<8x128xf32>
    %214 = vector.extract_strided_slice %186 {offsets = [0, 4], sizes = [8, 1], strides = [1, 1]} : vector<8x9xf32> to vector<8x1xf32>
    %215 = vector.broadcast %214 : vector<8x1xf32> to vector<8x128xf32>
    %216 = arith.mulf %215, %189 : vector<8x128xf32>
    %217 = arith.addf %213, %216 : vector<8x128xf32>
    %218 = vector.extract_strided_slice %186 {offsets = [0, 5], sizes = [8, 1], strides = [1, 1]} : vector<8x9xf32> to vector<8x1xf32>
    %219 = vector.broadcast %218 : vector<8x1xf32> to vector<8x128xf32>
    %220 = arith.mulf %219, %190 : vector<8x128xf32>
    %221 = arith.addf %217, %220 : vector<8x128xf32>
    %222 = arith.mulf %221, %187 : vector<8x128xf32>
    %223 = vector.extract_strided_slice %222 {offsets = [0, 0], sizes = [2, 128], strides = [1, 1]} : vector<8x128xf32> to vector<2x128xf32>
    %224 = vector.extract_strided_slice %222 {offsets = [2, 0], sizes = [2, 128], strides = [1, 1]} : vector<8x128xf32> to vector<2x128xf32>
    %225 = arith.addf %223, %224 : vector<2x128xf32>
    %226 = vector.extract_strided_slice %222 {offsets = [4, 0], sizes = [2, 128], strides = [1, 1]} : vector<8x128xf32> to vector<2x128xf32>
    %227 = arith.addf %225, %226 : vector<2x128xf32>
    %228 = vector.extract_strided_slice %222 {offsets = [6, 0], sizes = [2, 128], strides = [1, 1]} : vector<8x128xf32> to vector<2x128xf32>
    %229 = arith.addf %227, %228 : vector<2x128xf32>
    %c0_170 = arith.constant 0 : index
    %c128 = arith.constant 128 : index
    %230 = vector.load %arg9[%c0_170, %c128] : memref<2x384xf32, #tpu.memory_space<vmem>>, vector<2x128xf32>
    tpu.vector_store %arg9[%c0_170, %c128], %229 {strides = array<i32>} : memref<2x384xf32, #tpu.memory_space<vmem>>, vector<2x128xf32>,
    %231 = vector.extract_strided_slice %186 {offsets = [0, 6], sizes = [8, 1], strides = [1, 1]} : vector<8x9xf32> to vector<8x1xf32>
    %232 = vector.broadcast %231 : vector<8x1xf32> to vector<8x128xf32>
    %233 = arith.mulf %232, %188 : vector<8x128xf32>
    %234 = vector.extract_strided_slice %186 {offsets = [0, 7], sizes = [8, 1], strides = [1, 1]} : vector<8x9xf32> to vector<8x1xf32>
    %235 = vector.broadcast %234 : vector<8x1xf32> to vector<8x128xf32>
    %236 = arith.mulf %235, %189 : vector<8x128xf32>
    %237 = arith.addf %233, %236 : vector<8x128xf32>
    %238 = vector.extract_strided_slice %186 {offsets = [0, 8], sizes = [8, 1], strides = [1, 1]} : vector<8x9xf32> to vector<8x1xf32>
    %239 = vector.broadcast %238 : vector<8x1xf32> to vector<8x128xf32>
    %240 = arith.mulf %239, %190 : vector<8x128xf32>
    %241 = arith.addf %237, %240 : vector<8x128xf32>
    %242 = arith.mulf %241, %187 : vector<8x128xf32>
    %243 = vector.extract_strided_slice %242 {offsets = [0, 0], sizes = [2, 128], strides = [1, 1]} : vector<8x128xf32> to vector<2x128xf32>
    %244 = vector.extract_strided_slice %242 {offsets = [2, 0], sizes = [2, 128], strides = [1, 1]} : vector<8x128xf32> to vector<2x128xf32>
    %245 = arith.addf %243, %244 : vector<2x128xf32>
    %246 = vector.extract_strided_slice %242 {offsets = [4, 0], sizes = [2, 128], strides = [1, 1]} : vector<8x128xf32> to vector<2x128xf32>
    %247 = arith.addf %245, %246 : vector<2x128xf32>
    %248 = vector.extract_strided_slice %242 {offsets = [6, 0], sizes = [2, 128], strides = [1, 1]} : vector<8x128xf32> to vector<2x128xf32>
    %249 = arith.addf %247, %248 : vector<2x128xf32>
    %c0_171 = arith.constant 0 : index
    %c256 = arith.constant 256 : index
    %250 = vector.load %arg9[%c0_171, %c256] : memref<2x384xf32, #tpu.memory_space<vmem>>, vector<2x128xf32>
    tpu.vector_store %arg9[%c0_171, %c256], %249 {strides = array<i32>} : memref<2x384xf32, #tpu.memory_space<vmem>>, vector<2x128xf32>,
    return
  }
}

</mosaic_0001>

<bundles_post_ra>
// kernel: linear_model_forward.1
= control target key start
LH: loop header
LB: loop body
LE: loop exit
PB: predicated region body
PF: predicated region fallthrough
CT: control target
= control target key end

     0   :  { %14 = vsyncpa [#allocation5], 0  ;;  %s3815_s30 = smov [#allocation4]   ;;  %s4110_s0 = inlined_call_operand.vmem [shape: bf16[8,32], index: 0, kind: input, shape index: {}]   ;;  %s4111_s1 = inlined_call_operand.vmem [shape: bf16[32,256], index: 1, kind: input, shape index: {}]   ;;  %s4112_s2 = inlined_call_operand.vmem [shape: f32[1,256], index: 2, kind: input, shape index: {}]   ;;  %s4113_s3 = inlined_call_operand.hbm [shape: bf16[8,256,256], index: 3, kind: input, shape index: {}]   ;;  %s4114_s4 = inlined_call_operand.vmem [shape: f32[8,256], index: 4, kind: input, shape index: {}]   ;;  %s4115_s5 = inlined_call_operand.hbm [shape: bf16[256,384], index: 5, kind: input, shape index: {}]   ;;  %s4116_s6 = inlined_call_operand.vmem [shape: f32[1,384], index: 6, kind: input, shape index: {}]   ;;  %s4117_s7 = inlined_call_operand.vmem [shape: f32[8,9], index: 7, kind: input, shape index: {}]   ;;  %s4118_s8 = inlined_call_operand.vmem [shape: f32[8,128], index: 8, kind: input, shape index: {}]   ;;  %s4119_s9 = inlined_call_operand.vmem [shape: f32[2,384], index: 9, kind: output, shape index: {}]  }
   0x1   :  { %s28_s10 = sshll.u32 %s3815_s30, 4  ;;  %s29_s10 = int_to_ptr.vmem [resolvable:$true] %s28_s10 }
   0x2   :  { %s3604_s11 = scalar_lea.vmem %s29_s10, 6144  ;;  %p3609_p1 = scmp.lt.s32.totalorder %s29_s10, %s29_s10 }
   0x3   :  { %p3605_p0 = scmp.ne.s32.totalorder %s29_s10, %s3604_s11  ;;  %p3610_p2 = scmp.lt.s32.totalorder %s3604_s11, %s3604_s11 }
   0x5   :  { %p3611_p3 = por %p3610_p2, %p3609_p1 }
   0x7   :  { %p3612_p4 = pnand %p3611_p3, %p3605_p0 }
   0x9   :  { %3615 = shalt.err (!%p3612_p4)
}
   0xa   :  { %s3816_s12 = smov 192   ;;  %s3817_s13 = smov 12  }
   0xb   :  { %34 = dma.hbm_to_vmem [thread:$0]  %s4115_s5, 6144, %s29_s10, [#allocation5], %s3816_s12, %s3816_s12, %s3817_s13  }
   0xc   :  { %3797 = dma.done.wait [#allocation5], 6144  }
   0xd   :  { %3798 = vsyncadd [#allocation5], 4294961152  ;;  %v3818_v0 = vmov 0   ;;  %v3133_v1 = vld [vmem:[%s4111_s1 + $0x14] ss:$8 sps:$4 sm:$0xff]   ;;  %vm93_vm0 = vcmask 261120  }
   0xe   :  { %129 = vmatprep.mubr.bf16.mxu0 %v3818_v0  ;;  %v3135_v2 = vld [vmem:[%s4111_s1 + $0x10] ss:$8 sps:$4 sm:$0xff]   ;;  %109 = vmatprep.subr.bf16.mxu0 %v3133_v1  ;;  %v3136_v3 = vld [vmem:[%s4111_s1 + $0x4] ss:$8 sps:$4 sm:$0xff]   ;;  %v3138_v4 = vld [vmem:[%s4111_s1] ss:$8 sps:$4 sm:$0xff]  }
   0xf   :  { %110 = vmatpush1.bf16.msra.mxu0 %v3135_v2  ;;  %v56_v5 = vld [vmem:[%s4110_s0] sm:$0xf]  ;;  %s3819_s25 = smov [#allocation2]  }
  0x10   :  { %111 = vmatprep.subr.bf16.mxu0 %v3136_v3  ;;  %s52_s26 = sshll.u32 %s3819_s25, 4  ;;  %s3898_s26 = int_to_ptr.vmem [resolvable:$true] %s52_s26 }
  0x11   :  { %s3624_s27 = scalar_lea.vmem %s3898_s26, 4096  ;;  %s3628_s1 = scalar_lea.vmem %s3898_s26, 8192 }
  0x12   :  { %p3625_p5 = scmp.ne.s32.totalorder %s3898_s26, %s3624_s27  ;;  %p3629_p6 = scmp.lt.s32.totalorder %s3898_s26, %s3898_s26 }
  0x13   :  { %112 = vmatpush1.bf16.msra.mxu0 %v3138_v4  ;;  %p3630_p7 = scmp.lt.s32.totalorder %s3628_s1, %s3624_s27 }
  0x15   :  { %p3631_p8 = por %p3630_p7, %p3629_p6 }
  0x16   :  { %2783 = vmatmul.mubr.msk.bf16.vlgmr.msra.gmra.mxu0 %vm93_vm0, %v56_v5 }
  0x17   :  { %p3907_p9 = pnand %p3631_p8, %p3625_p5 }
  0x19   :  { %3635 = shalt.err (!%p3907_p9)  }
  0x1a   :  { %55 = dma.hbm_to_vmem [thread:$0]  %s4113_s3, 4096, %s3898_s26, [#allocation3]  ;;  %v63_v6 = vlaneseq  ;;  %v61_v9 = vld [vmem:[%s4112_s2] sm:$0x3] }
  0x1c   :  { %v3917_v7 = vshrl.u32 %v63_v6, 7 }
  0x1e   :  { %v3920_v8 = vsub.s32 0, %v3917_v7  ;;  %v3926_v10 = vsub.s32 1, %v3917_v7 }
  0x20   :  { %v66_v11 = vrot.slane %v61_v9, %v3920_v8  ;;  %v70_v12 = vrot.slane %v61_v9, %v3926_v10 }
  0xd6   :  { %v131_v13 = vpop.f32.mrf.mxu0 }
  0xd7   :  { %v132_v14 = vadd.f32 %v131_v13, %v66_v11 }
  0xd8   :  { %v133_v15 = vpop.f32.mrf.mxu0 }
  0xd9   :  { %v3930_v16 = vmax.f32 %v132_v14, 0.0  ;;  %v134_v17 = vadd.f32 %v133_v15, %v70_v12 }
  0xda   :  { %v135_v18 = vpop.f32.mrf.mxu0 }
  0xdb   :  { %v3932_v19 = vmax.f32 %v134_v17, 0.0 }
  0xdc   :  { %v136_v20 = vpop.f32.mrf.mxu0 }
  0xdd   :  { %3799 = dma.done.wait [#allocation3], 4096 }
  0xde   :  { %3800 = vsyncadd [#allocation3], 4294963200  ;;  %s144_s12 = scalar_lea.hbm %s4113_s3, 4096  ;;  %v159_v21 = vpack.c.bf16 %v3932_v19, %v3932_v19  ;;  %s3820_s13 = smov [#allocation2 + $0x100]  }
  0xdf   :  { %s154_s14 = sshll.u32 %s3820_s13, 4  ;;  %s3939_s14 = int_to_ptr.vmem [resolvable:$true] %s154_s14 }
  0xe0   :  { %396 = vmatprep.mubr.bf16.mxu1 %v159_v21  ;;  %s3646_s15 = scalar_lea.vmem %s3939_s14, 4096  ;;  %p3651_p11 = scmp.lt.s32.totalorder %s3939_s14, %s3898_s26 }
  0xe1   :  { %p3647_p10 = scmp.ne.s32.totalorder %s3939_s14, %s3646_s15  ;;  %p3652_p12 = scmp.lt.s32.totalorder %s3628_s1, %s3646_s15 }
  0xe3   :  { %p3653_p13 = por %p3652_p12, %p3651_p11 }
  0xe5   :  { %p3947_p0 = pnand %p3653_p13, %p3647_p10 }
  0xe7   :  { %3657 = shalt.err (!%p3947_p0)  }
  0xe8   :  { %157 = dma.hbm_to_vmem [thread:$0]  %s144_s12, 4096, %s3939_s14, [#allocation3 + $0x1]  ;;  %v158_v54 = vpack.c.bf16 %v3930_v16, %v3930_v16  ;;  %v192_v55 = vld [vmem:[%s4114_s4] ss:$8 sm:$0x3] }
  0xe9   :  { %v3139_v22 = vld [vmem:[#allocation2 + $0x74] ss:$8 sps:$4 sm:$0xff]   ;;  %v3141_v23 = vld [vmem:[#allocation2 + $0x70] ss:$8 sps:$4 sm:$0xff]   ;;  %v3142_v24 = vld [vmem:[#allocation2 + $0x64] ss:$8 sps:$4 sm:$0xff]   ;;  %v197_v56 = vrot.slane %v192_v55, %v3920_v8  ;;  %v201_v57 = vrot.slane %v192_v55, %v3926_v10 }
  0xea   :  { %364 = vmatprep.subr.bf16.mxu1 %v3139_v22  ;;  %v3144_v25 = vld [vmem:[#allocation2 + $0x60] ss:$8 sps:$4 sm:$0xff]   ;;  %v3145_v26 = vld [vmem:[#allocation2 + $0x54] ss:$8 sps:$4 sm:$0xff]   ;;  %v3147_v27 = vld [vmem:[#allocation2 + $0x50] ss:$8 sps:$4 sm:$0xff]  }
  0xeb   :  { %365 = vmatpush1.bf16.msra.mxu1 %v3141_v23  ;;  %v3148_v28 = vld [vmem:[#allocation2 + $0x44] ss:$8 sps:$4 sm:$0xff]   ;;  %v3150_v29 = vld [vmem:[#allocation2 + $0x40] ss:$8 sps:$4 sm:$0xff]   ;;  %v3151_v30 = vld [vmem:[#allocation2 + $0x34] ss:$8 sps:$4 sm:$0xff]  }
  0xec   :  { %366 = vmatprep.subr.bf16.mxu1 %v3142_v24  ;;  %v3153_v31 = vld [vmem:[#allocation2 + $0x30] ss:$8 sps:$4 sm:$0xff]   ;;  %v3154_v32 = vld [vmem:[#allocation2 + $0x24] ss:$8 sps:$4 sm:$0xff]   ;;  %v3156_v33 = vld [vmem:[#allocation2 + $0x20] ss:$8 sps:$4 sm:$0xff]  }
  0xed   :  { %v3157_v34 = vld [vmem:[#allocation2 + $0x14] ss:$8 sps:$4 sm:$0xff]   ;;  %v3159_v35 = vld [vmem:[#allocation2 + $0x10] ss:$8 sps:$4 sm:$0xff]   ;;  %v3160_v36 = vld [vmem:[#allocation2 + $0x4] ss:$8 sps:$4 sm:$0xff]  }
  0xee   :  { %v3162_v37 = vld [vmem:[#allocation2] ss:$8 sps:$4 sm:$0xff]   ;;  %v3163_v38 = vld [vmem:[#allocation2 + $0xf4] ss:$8 sps:$4 sm:$0xff]   ;;  %v3165_v39 = vld [vmem:[#allocation2 + $0xf0] ss:$8 sps:$4 sm:$0xff]  }
  0xef   :  { %367 = vmatpush1.bf16.msra.mxu1 %v3144_v25  ;;  %v3166_v40 = vld [vmem:[#allocation2 + $0xe4] ss:$8 sps:$4 sm:$0xff]   ;;  %v3168_v41 = vld [vmem:[#allocation2 + $0xe0] ss:$8 sps:$4 sm:$0xff]   ;;  %v3169_v42 = vld [vmem:[#allocation2 + $0xd4] ss:$8 sps:$4 sm:$0xff]  }
  0xf0   :  { %368 = vmatprep.subr.bf16.mxu1 %v3145_v26  ;;  %v3171_v43 = vld [vmem:[#allocation2 + $0xd0] ss:$8 sps:$4 sm:$0xff]   ;;  %v3172_v44 = vld [vmem:[#allocation2 + $0xc4] ss:$8 sps:$4 sm:$0xff]   ;;  %v3174_v45 = vld [vmem:[#allocation2 + $0xc0] ss:$8 sps:$4 sm:$0xff]  }
  0xf1   :  { %v3175_v46 = vld [vmem:[#allocation2 + $0xb4] ss:$8 sps:$4 sm:$0xff]   ;;  %v3177_v47 = vld [vmem:[#allocation2 + $0xb0] ss:$8 sps:$4 sm:$0xff]   ;;  %v3178_v48 = vld [vmem:[#allocation2 + $0xa4] ss:$8 sps:$4 sm:$0xff]  }
  0xf2   :  { %v3180_v49 = vld [vmem:[#allocation2 + $0xa0] ss:$8 sps:$4 sm:$0xff]   ;;  %v3181_v50 = vld [vmem:[#allocation2 + $0x94] ss:$8 sps:$4 sm:$0xff]   ;;  %v3183_v51 = vld [vmem:[#allocation2 + $0x90] ss:$8 sps:$4 sm:$0xff]  }
  0xf3   :  { %369 = vmatpush1.bf16.msra.mxu1 %v3147_v27  ;;  %v3184_v52 = vld [vmem:[#allocation2 + $0x84] ss:$8 sps:$4 sm:$0xff]   ;;  %v3186_v53 = vld [vmem:[#allocation2 + $0x80] ss:$8 sps:$4 sm:$0xff]  }
  0xf4   :  { %370 = vmatprep.subr.bf16.mxu1 %v3148_v28 }
  0xf7   :  { %371 = vmatpush1.bf16.msra.mxu1 %v3150_v29 }
  0xf8   :  { %372 = vmatprep.subr.bf16.mxu1 %v3151_v30 }
  0xfb   :  { %373 = vmatpush1.bf16.msra.mxu1 %v3153_v31 }
  0xfc   :  { %374 = vmatprep.subr.bf16.mxu1 %v3154_v32 }
  0xff   :  { %375 = vmatpush1.bf16.msra.mxu1 %v3156_v33 }
 0x100   :  { %376 = vmatprep.subr.bf16.mxu1 %v3157_v34 }
 0x103   :  { %377 = vmatpush1.bf16.msra.mxu1 %v3159_v35 }
 0x104   :  { %378 = vmatprep.subr.bf16.mxu1 %v3160_v36 }
 0x107   :  { %379 = vmatpush1.bf16.msra.mxu1 %v3162_v37 }
 0x108   :  { %380 = vmatprep.subr.bf16.mxu1 %v3163_v38 }
 0x10b   :  { %381 = vmatpush2.bf16.msra.mxu1 %v3165_v39 }
 0x10c   :  { %382 = vmatprep.subr.bf16.mxu1 %v3166_v40 }
 0x10f   :  { %383 = vmatpush2.bf16.msra.mxu1 %v3168_v41 }
 0x110   :  { %384 = vmatprep.subr.bf16.mxu1 %v3169_v42 }
 0x113   :  { %385 = vmatpush2.bf16.msra.mxu1 %v3171_v43 }
 0x114   :  { %386 = vmatprep.subr.bf16.mxu1 %v3172_v44 }
 0x117   :  { %387 = vmatpush2.bf16.msra.mxu1 %v3174_v45 }
 0x118   :  { %388 = vmatprep.subr.bf16.mxu1 %v3175_v46 }
 0x11b   :  { %389 = vmatpush2.bf16.msra.mxu1 %v3177_v47 }
 0x11c   :  { %390 = vmatprep.subr.bf16.mxu1 %v3178_v48 }
 0x11f   :  { %391 = vmatpush2.bf16.msra.mxu1 %v3180_v49 }
 0x120   :  { %392 = vmatprep.subr.bf16.mxu1 %v3181_v50 }
 0x123   :  { %393 = vmatpush2.bf16.msra.mxu1 %v3183_v51 }
 0x124   :  { %394 = vmatprep.subr.bf16.mxu1 %v3184_v52 }
 0x127   :  { %395 = vmatpush2.bf16.msra.mxu1 %v3186_v53 }
 0x12a   :  { %397 = vmatmul.mubr.bf16.vlgmr.msra.gmra.mxu1 %v158_v54 }
 0x1ea   :  { %v398_v58 = vpop.f32.mrf.mxu1 }
 0x1eb   :  { %v3961_v59 = vadd.f32 %v398_v58, %v197_v56 }
 0x1ec   :  { %v400_v60 = vpop.f32.mrf.mxu1 }
 0x1ed   :  { %v405_v61 = vmax.f32 %v3961_v59, 0.0  ;;  %v401_v62 = vadd.f32 %v400_v60, %v201_v57 }
 0x1ee   :  { %v402_v63 = vpop.f32.mrf.mxu1 }
 0x1ef   :  { %v406_v1 = vmax.f32 %v401_v62, 0.0 }
 0x1f0   :  { %v403_v2 = vpop.f32.mrf.mxu1 }
 0x1f1   :  { %3801 = dma.done.wait [#allocation3 + $0x1], 4096 }
 0x1f2   :  { %3802 = vsyncadd [#allocation3 + $0x1], 4294963200  ;;  %s409_s21 = scalar_lea.hbm %s4113_s3, 8192  ;;  %v422_v3 = vpack.c.bf16 %v406_v1, %v406_v1 }
 0x1f3   :  { %3680 = shalt.err (!%p3907_p9)  }
 0x1f4   :  { %420 = dma.hbm_to_vmem [thread:$0]  %s409_s21, 4096, %s3898_s26, [#allocation3]  ;;  %660 = vmatprep.mubr.bf16.mxu0 %v422_v3  ;;  %v421_v41 = vpack.c.bf16 %v405_v61, %v405_v61  ;;  %v2816_v42 = vld [vmem:[%s4114_s4 + $0x1] ss:$8 sm:$0x3] }
 0x1f5   :  { %v3187_v4 = vld [vmem:[#allocation2 + $0x174] ss:$8 sps:$4 sm:$0xff]   ;;  %v3189_v5 = vld [vmem:[#allocation2 + $0x170] ss:$8 sps:$4 sm:$0xff]   ;;  %v3190_v6 = vld [vmem:[#allocation2 + $0x164] ss:$8 sps:$4 sm:$0xff]   ;;  %v461_v43 = vrot.slane %v2816_v42, %v3920_v8  ;;  %v465_v44 = vrot.slane %v2816_v42, %v3926_v10 }
 0x1f6   :  { %628 = vmatprep.subr.bf16.mxu0 %v3187_v4  ;;  %v3192_v9 = vld [vmem:[#allocation2 + $0x160] ss:$8 sps:$4 sm:$0xff]   ;;  %v3193_v11 = vld [vmem:[#allocation2 + $0x154] ss:$8 sps:$4 sm:$0xff]   ;;  %v3195_v12 = vld [vmem:[#allocation2 + $0x150] ss:$8 sps:$4 sm:$0xff]  }
 0x1f7   :  { %629 = vmatpush1.bf16.msra.mxu0 %v3189_v5  ;;  %v3196_v13 = vld [vmem:[#allocation2 + $0x144] ss:$8 sps:$4 sm:$0xff]   ;;  %v3198_v14 = vld [vmem:[#allocation2 + $0x140] ss:$8 sps:$4 sm:$0xff]   ;;  %v3199_v15 = vld [vmem:[#allocation2 + $0x134] ss:$8 sps:$4 sm:$0xff]  }
 0x1f8   :  { %630 = vmatprep.subr.bf16.mxu0 %v3190_v6  ;;  %v3201_v17 = vld [vmem:[#allocation2 + $0x130] ss:$8 sps:$4 sm:$0xff]   ;;  %v3202_v18 = vld [vmem:[#allocation2 + $0x124] ss:$8 sps:$4 sm:$0xff]   ;;  %v3204_v20 = vld [vmem:[#allocation2 + $0x120] ss:$8 sps:$4 sm:$0xff]  }
 0x1f9   :  { %v3205_v21 = vld [vmem:[#allocation2 + $0x114] ss:$8 sps:$4 sm:$0xff]   ;;  %v3207_v22 = vld [vmem:[#allocation2 + $0x110] ss:$8 sps:$4 sm:$0xff]   ;;  %v3208_v23 = vld [vmem:[#allocation2 + $0x104] ss:$8 sps:$4 sm:$0xff]  }
 0x1fa   :  { %v3210_v24 = vld [vmem:[#allocation2 + $0x100] ss:$8 sps:$4 sm:$0xff]   ;;  %v3211_v25 = vld [vmem:[#allocation2 + $0x1f4] ss:$8 sps:$4 sm:$0xff]   ;;  %v3213_v26 = vld [vmem:[#allocation2 + $0x1f0] ss:$8 sps:$4 sm:$0xff]  }
 0x1fb   :  { %631 = vmatpush1.bf16.msra.mxu0 %v3192_v9  ;;  %v3214_v27 = vld [vmem:[#allocation2 + $0x1e4] ss:$8 sps:$4 sm:$0xff]   ;;  %v3216_v28 = vld [vmem:[#allocation2 + $0x1e0] ss:$8 sps:$4 sm:$0xff]   ;;  %v3217_v29 = vld [vmem:[#allocation2 + $0x1d4] ss:$8 sps:$4 sm:$0xff]  }
 0x1fc   :  { %632 = vmatprep.subr.bf16.mxu0 %v3193_v11  ;;  %v3219_v30 = vld [vmem:[#allocation2 + $0x1d0] ss:$8 sps:$4 sm:$0xff]   ;;  %v3220_v31 = vld [vmem:[#allocation2 + $0x1c4] ss:$8 sps:$4 sm:$0xff]   ;;  %v3222_v32 = vld [vmem:[#allocation2 + $0x1c0] ss:$8 sps:$4 sm:$0xff]  }
 0x1fd   :  { %v3223_v33 = vld [vmem:[#allocation2 + $0x1b4] ss:$8 sps:$4 sm:$0xff]   ;;  %v3225_v34 = vld [vmem:[#allocation2 + $0x1b0] ss:$8 sps:$4 sm:$0xff]   ;;  %v3226_v35 = vld [vmem:[#allocation2 + $0x1a4] ss:$8 sps:$4 sm:$0xff]  }
 0x1fe   :  { %v3228_v36 = vld [vmem:[#allocation2 + $0x1a0] ss:$8 sps:$4 sm:$0xff]   ;;  %v3229_v37 = vld [vmem:[#allocation2 + $0x194] ss:$8 sps:$4 sm:$0xff]   ;;  %v3231_v38 = vld [vmem:[#allocation2 + $0x190] ss:$8 sps:$4 sm:$0xff]  }
 0x1ff   :  { %633 = vmatpush1.bf16.msra.mxu0 %v3195_v12  ;;  %v3232_v39 = vld [vmem:[#allocation2 + $0x184] ss:$8 sps:$4 sm:$0xff]   ;;  %v3234_v40 = vld [vmem:[#allocation2 + $0x180] ss:$8 sps:$4 sm:$0xff]  }
 0x200   :  { %634 = vmatprep.subr.bf16.mxu0 %v3196_v13 }
 0x203   :  { %635 = vmatpush1.bf16.msra.mxu0 %v3198_v14 }
 0x204   :  { %636 = vmatprep.subr.bf16.mxu0 %v3199_v15 }
 0x207   :  { %637 = vmatpush1.bf16.msra.mxu0 %v3201_v17 }
 0x208   :  { %638 = vmatprep.subr.bf16.mxu0 %v3202_v18 }
 0x20b   :  { %639 = vmatpush1.bf16.msra.mxu0 %v3204_v20 }
 0x20c   :  { %640 = vmatprep.subr.bf16.mxu0 %v3205_v21 }
 0x20f   :  { %641 = vmatpush1.bf16.msra.mxu0 %v3207_v22 }
 0x210   :  { %642 = vmatprep.subr.bf16.mxu0 %v3208_v23 }
 0x213   :  { %643 = vmatpush1.bf16.msra.mxu0 %v3210_v24 }
 0x214   :  { %644 = vmatprep.subr.bf16.mxu0 %v3211_v25 }
 0x217   :  { %645 = vmatpush2.bf16.msra.mxu0 %v3213_v26 }
 0x218   :  { %646 = vmatprep.subr.bf16.mxu0 %v3214_v27 }
 0x21b   :  { %647 = vmatpush2.bf16.msra.mxu0 %v3216_v28 }
 0x21c   :  { %648 = vmatprep.subr.bf16.mxu0 %v3217_v29 }
 0x21f   :  { %649 = vmatpush2.bf16.msra.mxu0 %v3219_v30 }
 0x220   :  { %650 = vmatprep.subr.bf16.mxu0 %v3220_v31 }
 0x223   :  { %651 = vmatpush2.bf16.msra.mxu0 %v3222_v32 }
 0x224   :  { %652 = vmatprep.subr.bf16.mxu0 %v3223_v33 }
 0x227   :  { %653 = vmatpush2.bf16.msra.mxu0 %v3225_v34 }
 0x228   :  { %654 = vmatprep.subr.bf16.mxu0 %v3226_v35 }
 0x22b   :  { %655 = vmatpush2.bf16.msra.mxu0 %v3228_v36 }
 0x22c   :  { %656 = vmatprep.subr.bf16.mxu0 %v3229_v37 }
 0x22f   :  { %657 = vmatpush2.bf16.msra.mxu0 %v3231_v38 }
 0x230   :  { %658 = vmatprep.subr.bf16.mxu0 %v3232_v39 }
 0x233   :  { %659 = vmatpush2.bf16.msra.mxu0 %v3234_v40 }
 0x236   :  { %661 = vmatmul.mubr.bf16.vlgmr.msra.gmra.mxu0 %v421_v41 }
 0x2f6   :  { %v662_v45 = vpop.f32.mrf.mxu0 }
 0x2f7   :  { %v663_v46 = vadd.f32 %v662_v45, %v461_v43 }
 0x2f8   :  { %v664_v47 = vpop.f32.mrf.mxu0 }
 0x2f9   :  { %v669_v48 = vmax.f32 %v663_v46, 0.0  ;;  %v665_v49 = vadd.f32 %v664_v47, %v465_v44 }
 0x2fa   :  { %v666_v50 = vpop.f32.mrf.mxu0 }
 0x2fb   :  { %v3979_v51 = vadd.f32 %v669_v48, %v3930_v16  ;;  %v670_v52 = vmax.f32 %v665_v49, 0.0 }
 0x2fc   :  { %v667_v53 = vpop.f32.mrf.mxu0 }
 0x2fd   :  { %v3982_v54 = vadd.f32 %v670_v52, %v3932_v19 }
 0x2fe   :  { %3803 = dma.done.wait [#allocation3], 4096 }
 0x2ff   :  { %3804 = vsyncadd [#allocation3], 4294963200  ;;  %s675_s25 = scalar_lea.hbm %s4113_s3, 12288  ;;  %v688_v55 = vpack.c.bf16 %v3982_v54, %v3982_v54 }
 0x300   :  { %3703 = shalt.err (!%p3947_p0)  }
 0x301   :  { %686 = dma.hbm_to_vmem [thread:$0]  %s675_s25, 4096, %s3939_s14, [#allocation3 + $0x1]  ;;  %926 = vmatprep.mubr.bf16.mxu1 %v688_v55  ;;  %v687_v28 = vpack.c.bf16 %v3979_v51, %v3979_v51  ;;  %v2849_v29 = vld [vmem:[%s4114_s4 + $0x2] ss:$8 sm:$0x3] }
 0x302   :  { %v3235_v16 = vld [vmem:[#allocation2 + $0x74] ss:$8 sps:$4 sm:$0xff]   ;;  %v3237_v56 = vld [vmem:[#allocation2 + $0x70] ss:$8 sps:$4 sm:$0xff]   ;;  %v3238_v19 = vld [vmem:[#allocation2 + $0x64] ss:$8 sps:$4 sm:$0xff]   ;;  %v727_v30 = vrot.slane %v2849_v29, %v3920_v8  ;;  %v731_v31 = vrot.slane %v2849_v29, %v3926_v10 }
 0x303   :  { %894 = vmatprep.subr.bf16.mxu1 %v3235_v16  ;;  %v3240_v57 = vld [vmem:[#allocation2 + $0x60] ss:$8 sps:$4 sm:$0xff]   ;;  %v3241_v58 = vld [vmem:[#allocation2 + $0x54] ss:$8 sps:$4 sm:$0xff]   ;;  %v3243_v59 = vld [vmem:[#allocation2 + $0x50] ss:$8 sps:$4 sm:$0xff]  }
 0x304   :  { %895 = vmatpush1.bf16.msra.mxu1 %v3237_v56  ;;  %v3244_v60 = vld [vmem:[#allocation2 + $0x44] ss:$8 sps:$4 sm:$0xff]   ;;  %v3246_v61 = vld [vmem:[#allocation2 + $0x40] ss:$8 sps:$4 sm:$0xff]   ;;  %v3247_v62 = vld [vmem:[#allocation2 + $0x34] ss:$8 sps:$4 sm:$0xff]  }
 0x305   :  { %896 = vmatprep.subr.bf16.mxu1 %v3238_v19  ;;  %v3249_v63 = vld [vmem:[#allocation2 + $0x30] ss:$8 sps:$4 sm:$0xff]   ;;  %v3250_v1 = vld [vmem:[#allocation2 + $0x24] ss:$8 sps:$4 sm:$0xff]   ;;  %v3252_v2 = vld [vmem:[#allocation2 + $0x20] ss:$8 sps:$4 sm:$0xff]  }
 0x306   :  { %v3253_v3 = vld [vmem:[#allocation2 + $0x14] ss:$8 sps:$4 sm:$0xff]   ;;  %v3255_v4 = vld [vmem:[#allocation2 + $0x10] ss:$8 sps:$4 sm:$0xff]   ;;  %v3256_v5 = vld [vmem:[#allocation2 + $0x4] ss:$8 sps:$4 sm:$0xff]  }
 0x307   :  { %v3258_v6 = vld [vmem:[#allocation2] ss:$8 sps:$4 sm:$0xff]   ;;  %v3259_v9 = vld [vmem:[#allocation2 + $0xf4] ss:$8 sps:$4 sm:$0xff]   ;;  %v3261_v11 = vld [vmem:[#allocation2 + $0xf0] ss:$8 sps:$4 sm:$0xff]  }
 0x308   :  { %897 = vmatpush1.bf16.msra.mxu1 %v3240_v57  ;;  %v3262_v12 = vld [vmem:[#allocation2 + $0xe4] ss:$8 sps:$4 sm:$0xff]   ;;  %v3264_v13 = vld [vmem:[#allocation2 + $0xe0] ss:$8 sps:$4 sm:$0xff]   ;;  %v3265_v14 = vld [vmem:[#allocation2 + $0xd4] ss:$8 sps:$4 sm:$0xff]  }
 0x309   :  { %898 = vmatprep.subr.bf16.mxu1 %v3241_v58  ;;  %v3267_v15 = vld [vmem:[#allocation2 + $0xd0] ss:$8 sps:$4 sm:$0xff]   ;;  %v3268_v17 = vld [vmem:[#allocation2 + $0xc4] ss:$8 sps:$4 sm:$0xff]   ;;  %v3270_v18 = vld [vmem:[#allocation2 + $0xc0] ss:$8 sps:$4 sm:$0xff]  }
 0x30a   :  { %v3271_v20 = vld [vmem:[#allocation2 + $0xb4] ss:$8 sps:$4 sm:$0xff]   ;;  %v3273_v21 = vld [vmem:[#allocation2 + $0xb0] ss:$8 sps:$4 sm:$0xff]   ;;  %v3274_v22 = vld [vmem:[#allocation2 + $0xa4] ss:$8 sps:$4 sm:$0xff]  }
 0x30b   :  { %v3276_v23 = vld [vmem:[#allocation2 + $0xa0] ss:$8 sps:$4 sm:$0xff]   ;;  %v3277_v24 = vld [vmem:[#allocation2 + $0x94] ss:$8 sps:$4 sm:$0xff]   ;;  %v3279_v25 = vld [vmem:[#allocation2 + $0x90] ss:$8 sps:$4 sm:$0xff]  }
 0x30c   :  { %899 = vmatpush1.bf16.msra.mxu1 %v3243_v59  ;;  %v3280_v26 = vld [vmem:[#allocation2 + $0x84] ss:$8 sps:$4 sm:$0xff]   ;;  %v3282_v27 = vld [vmem:[#allocation2 + $0x80] ss:$8 sps:$4 sm:$0xff]  }
 0x30d   :  { %900 = vmatprep.subr.bf16.mxu1 %v3244_v60 }
 0x310   :  { %901 = vmatpush1.bf16.msra.mxu1 %v3246_v61 }
 0x311   :  { %902 = vmatprep.subr.bf16.mxu1 %v3247_v62 }
 0x314   :  { %903 = vmatpush1.bf16.msra.mxu1 %v3249_v63 }
 0x315   :  { %904 = vmatprep.subr.bf16.mxu1 %v3250_v1 }
 0x318   :  { %905 = vmatpush1.bf16.msra.mxu1 %v3252_v2 }
 0x319   :  { %906 = vmatprep.subr.bf16.mxu1 %v3253_v3 }
 0x31c   :  { %907 = vmatpush1.bf16.msra.mxu1 %v3255_v4 }
 0x31d   :  { %908 = vmatprep.subr.bf16.mxu1 %v3256_v5 }
 0x320   :  { %909 = vmatpush1.bf16.msra.mxu1 %v3258_v6 }
 0x321   :  { %910 = vmatprep.subr.bf16.mxu1 %v3259_v9 }
 0x324   :  { %911 = vmatpush2.bf16.msra.mxu1 %v3261_v11 }
 0x325   :  { %912 = vmatprep.subr.bf16.mxu1 %v3262_v12 }
 0x328   :  { %913 = vmatpush2.bf16.msra.mxu1 %v3264_v13 }
 0x329   :  { %914 = vmatprep.subr.bf16.mxu1 %v3265_v14 }
 0x32c   :  { %915 = vmatpush2.bf16.msra.mxu1 %v3267_v15 }
 0x32d   :  { %916 = vmatprep.subr.bf16.mxu1 %v3268_v17 }
 0x330   :  { %917 = vmatpush2.bf16.msra.mxu1 %v3270_v18 }
 0x331   :  { %918 = vmatprep.subr.bf16.mxu1 %v3271_v20 }
 0x334   :  { %919 = vmatpush2.bf16.msra.mxu1 %v3273_v21 }
 0x335   :  { %920 = vmatprep.subr.bf16.mxu1 %v3274_v22 }
 0x338   :  { %921 = vmatpush2.bf16.msra.mxu1 %v3276_v23 }
 0x339   :  { %922 = vmatprep.subr.bf16.mxu1 %v3277_v24 }
 0x33c   :  { %923 = vmatpush2.bf16.msra.mxu1 %v3279_v25 }
 0x33d   :  { %924 = vmatprep.subr.bf16.mxu1 %v3280_v26 }
 0x340   :  { %925 = vmatpush2.bf16.msra.mxu1 %v3282_v27 }
 0x343   :  { %927 = vmatmul.mubr.bf16.vlgmr.msra.gmra.mxu1 %v687_v28 }
 0x403   :  { %v928_v32 = vpop.f32.mrf.mxu1 }
 0x404   :  { %v3999_v33 = vadd.f32 %v928_v32, %v727_v30 }
 0x405   :  { %v930_v34 = vpop.f32.mrf.mxu1 }
 0x406   :  { %v935_v35 = vmax.f32 %v3999_v33, 0.0  ;;  %v931_v36 = vadd.f32 %v930_v34, %v731_v31 }
 0x407   :  { %v932_v37 = vpop.f32.mrf.mxu1 }
 0x408   :  { %v936_v38 = vmax.f32 %v931_v36, 0.0 }
 0x409   :  { %v933_v39 = vpop.f32.mrf.mxu1 }
 0x40a   :  { %3805 = dma.done.wait [#allocation3 + $0x1], 4096 }
 0x40b   :  { %3806 = vsyncadd [#allocation3 + $0x1], 4294963200  ;;  %s939_s30 = scalar_lea.hbm %s4113_s3, 16384  ;;  %v952_v40 = vpack.c.bf16 %v936_v38, %v936_v38 }
 0x40c   :  { %3726 = shalt.err (!%p3907_p9)  }
 0x40d   :  { %950 = dma.hbm_to_vmem [thread:$0]  %s939_s30, 4096, %s3898_s26, [#allocation3]  ;;  %1190 = vmatprep.mubr.bf16.mxu0 %v952_v40  ;;  %v951_v13 = vpack.c.bf16 %v935_v35, %v935_v35  ;;  %v2882_v14 = vld [vmem:[%s4114_s4 + $0x3] ss:$8 sm:$0x3] }
 0x40e   :  { %v3283_v41 = vld [vmem:[#allocation2 + $0x174] ss:$8 sps:$4 sm:$0xff]   ;;  %v3285_v42 = vld [vmem:[#allocation2 + $0x170] ss:$8 sps:$4 sm:$0xff]   ;;  %v3286_v43 = vld [vmem:[#allocation2 + $0x164] ss:$8 sps:$4 sm:$0xff]   ;;  %v991_v15 = vrot.slane %v2882_v14, %v3920_v8  ;;  %v995_v17 = vrot.slane %v2882_v14, %v3926_v10 }
 0x40f   :  { %1158 = vmatprep.subr.bf16.mxu0 %v3283_v41  ;;  %v3288_v44 = vld [vmem:[#allocation2 + $0x160] ss:$8 sps:$4 sm:$0xff]   ;;  %v3289_v45 = vld [vmem:[#allocation2 + $0x154] ss:$8 sps:$4 sm:$0xff]   ;;  %v3291_v46 = vld [vmem:[#allocation2 + $0x150] ss:$8 sps:$4 sm:$0xff]  }
 0x410   :  { %1159 = vmatpush1.bf16.msra.mxu0 %v3285_v42  ;;  %v3292_v47 = vld [vmem:[#allocation2 + $0x144] ss:$8 sps:$4 sm:$0xff]   ;;  %v3294_v48 = vld [vmem:[#allocation2 + $0x140] ss:$8 sps:$4 sm:$0xff]   ;;  %v3295_v49 = vld [vmem:[#allocation2 + $0x134] ss:$8 sps:$4 sm:$0xff]  }
 0x411   :  { %1160 = vmatprep.subr.bf16.mxu0 %v3286_v43  ;;  %v3297_v50 = vld [vmem:[#allocation2 + $0x130] ss:$8 sps:$4 sm:$0xff]   ;;  %v3298_v52 = vld [vmem:[#allocation2 + $0x124] ss:$8 sps:$4 sm:$0xff]   ;;  %v3300_v53 = vld [vmem:[#allocation2 + $0x120] ss:$8 sps:$4 sm:$0xff]  }
 0x412   :  { %v3301_v55 = vld [vmem:[#allocation2 + $0x114] ss:$8 sps:$4 sm:$0xff]   ;;  %v3303_v16 = vld [vmem:[#allocation2 + $0x110] ss:$8 sps:$4 sm:$0xff]   ;;  %v3304_v56 = vld [vmem:[#allocation2 + $0x104] ss:$8 sps:$4 sm:$0xff]  }
 0x413   :  { %v3306_v19 = vld [vmem:[#allocation2 + $0x100] ss:$8 sps:$4 sm:$0xff]   ;;  %v3307_v57 = vld [vmem:[#allocation2 + $0x1f4] ss:$8 sps:$4 sm:$0xff]   ;;  %v3309_v58 = vld [vmem:[#allocation2 + $0x1f0] ss:$8 sps:$4 sm:$0xff]  }
 0x414   :  { %1161 = vmatpush1.bf16.msra.mxu0 %v3288_v44  ;;  %v3310_v59 = vld [vmem:[#allocation2 + $0x1e4] ss:$8 sps:$4 sm:$0xff]   ;;  %v3312_v60 = vld [vmem:[#allocation2 + $0x1e0] ss:$8 sps:$4 sm:$0xff]   ;;  %v3313_v61 = vld [vmem:[#allocation2 + $0x1d4] ss:$8 sps:$4 sm:$0xff]  }
 0x415   :  { %1162 = vmatprep.subr.bf16.mxu0 %v3289_v45  ;;  %v3315_v62 = vld [vmem:[#allocation2 + $0x1d0] ss:$8 sps:$4 sm:$0xff]   ;;  %v3316_v63 = vld [vmem:[#allocation2 + $0x1c4] ss:$8 sps:$4 sm:$0xff]   ;;  %v3318_v1 = vld [vmem:[#allocation2 + $0x1c0] ss:$8 sps:$4 sm:$0xff]  }
 0x416   :  { %v3319_v2 = vld [vmem:[#allocation2 + $0x1b4] ss:$8 sps:$4 sm:$0xff]   ;;  %v3321_v3 = vld [vmem:[#allocation2 + $0x1b0] ss:$8 sps:$4 sm:$0xff]   ;;  %v3322_v4 = vld [vmem:[#allocation2 + $0x1a4] ss:$8 sps:$4 sm:$0xff]  }
 0x417   :  { %v3324_v5 = vld [vmem:[#allocation2 + $0x1a0] ss:$8 sps:$4 sm:$0xff]   ;;  %v3325_v6 = vld [vmem:[#allocation2 + $0x194] ss:$8 sps:$4 sm:$0xff]   ;;  %v3327_v9 = vld [vmem:[#allocation2 + $0x190] ss:$8 sps:$4 sm:$0xff]  }
 0x418   :  { %1163 = vmatpush1.bf16.msra.mxu0 %v3291_v46  ;;  %v3328_v11 = vld [vmem:[#allocation2 + $0x184] ss:$8 sps:$4 sm:$0xff]   ;;  %v3330_v12 = vld [vmem:[#allocation2 + $0x180] ss:$8 sps:$4 sm:$0xff]  }
 0x419   :  { %1164 = vmatprep.subr.bf16.mxu0 %v3292_v47 }
 0x41c   :  { %1165 = vmatpush1.bf16.msra.mxu0 %v3294_v48 }
 0x41d   :  { %1166 = vmatprep.subr.bf16.mxu0 %v3295_v49 }
 0x420   :  { %1167 = vmatpush1.bf16.msra.mxu0 %v3297_v50 }
 0x421   :  { %1168 = vmatprep.subr.bf16.mxu0 %v3298_v52 }
 0x424   :  { %1169 = vmatpush1.bf16.msra.mxu0 %v3300_v53 }
 0x425   :  { %1170 = vmatprep.subr.bf16.mxu0 %v3301_v55 }
 0x428   :  { %1171 = vmatpush1.bf16.msra.mxu0 %v3303_v16 }
 0x429   :  { %1172 = vmatprep.subr.bf16.mxu0 %v3304_v56 }
 0x42c   :  { %1173 = vmatpush1.bf16.msra.mxu0 %v3306_v19 }
 0x42d   :  { %1174 = vmatprep.subr.bf16.mxu0 %v3307_v57 }
 0x430   :  { %1175 = vmatpush2.bf16.msra.mxu0 %v3309_v58 }
 0x431   :  { %1176 = vmatprep.subr.bf16.mxu0 %v3310_v59 }
 0x434   :  { %1177 = vmatpush2.bf16.msra.mxu0 %v3312_v60 }
 0x435   :  { %1178 = vmatprep.subr.bf16.mxu0 %v3313_v61 }
 0x438   :  { %1179 = vmatpush2.bf16.msra.mxu0 %v3315_v62 }
 0x439   :  { %1180 = vmatprep.subr.bf16.mxu0 %v3316_v63 }
 0x43c   :  { %1181 = vmatpush2.bf16.msra.mxu0 %v3318_v1 }
 0x43d   :  { %1182 = vmatprep.subr.bf16.mxu0 %v3319_v2 }
 0x440   :  { %1183 = vmatpush2.bf16.msra.mxu0 %v3321_v3 }
 0x441   :  { %1184 = vmatprep.subr.bf16.mxu0 %v3322_v4 }
 0x444   :  { %1185 = vmatpush2.bf16.msra.mxu0 %v3324_v5 }
 0x445   :  { %1186 = vmatprep.subr.bf16.mxu0 %v3325_v6 }
 0x448   :  { %1187 = vmatpush2.bf16.msra.mxu0 %v3327_v9 }
 0x449   :  { %1188 = vmatprep.subr.bf16.mxu0 %v3328_v11 }
 0x44c   :  { %1189 = vmatpush2.bf16.msra.mxu0 %v3330_v12 }
 0x44f   :  { %1191 = vmatmul.mubr.bf16.vlgmr.msra.gmra.mxu0 %v951_v13 }
 0x50f   :  { %v1192_v18 = vpop.f32.mrf.mxu0 }
 0x510   :  { %v1193_v20 = vadd.f32 %v1192_v18, %v991_v15 }
 0x511   :  { %v1194_v21 = vpop.f32.mrf.mxu0 }
 0x512   :  { %v1199_v22 = vmax.f32 %v1193_v20, 0.0  ;;  %v1195_v23 = vadd.f32 %v1194_v21, %v995_v17 }
 0x513   :  { %v1196_v24 = vpop.f32.mrf.mxu0 }
 0x514   :  { %v4017_v25 = vadd.f32 %v1199_v22, %v3979_v51  ;;  %v1200_v26 = vmax.f32 %v1195_v23, 0.0 }
 0x515   :  { %v1197_v27 = vpop.f32.mrf.mxu0 }
 0x516   :  { %v4020_v28 = vadd.f32 %v1200_v26, %v3982_v54 }
 0x517   :  { %3807 = dma.done.wait [#allocation3], 4096 }
 0x518   :  { %3808 = vsyncadd [#allocation3], 4294963200  ;;  %s1205_s13 = scalar_lea.hbm %s4113_s3, 20480  ;;  %v1218_v29 = vpack.c.bf16 %v4020_v28, %v4020_v28 }
 0x519   :  { %3749 = shalt.err (!%p3947_p0)  }
 0x51a   :  { %1216 = dma.hbm_to_vmem [thread:$0]  %s1205_s13, 4096, %s3939_s14, [#allocation3 + $0x1]  ;;  %1456 = vmatprep.mubr.bf16.mxu1 %v1218_v29  ;;  %v1217_v60 = vpack.c.bf16 %v4017_v25, %v4017_v25  ;;  %v2915_v61 = vld [vmem:[%s4114_s4 + $0x4] ss:$8 sm:$0x3] }
 0x51b   :  { %v3331_v51 = vld [vmem:[#allocation2 + $0x74] ss:$8 sps:$4 sm:$0xff]   ;;  %v3333_v30 = vld [vmem:[#allocation2 + $0x70] ss:$8 sps:$4 sm:$0xff]   ;;  %v3334_v54 = vld [vmem:[#allocation2 + $0x64] ss:$8 sps:$4 sm:$0xff]   ;;  %v1257_v62 = vrot.slane %v2915_v61, %v3920_v8  ;;  %v1261_v63 = vrot.slane %v2915_v61, %v3926_v10 }
 0x51c   :  { %1424 = vmatprep.subr.bf16.mxu1 %v3331_v51  ;;  %v3336_v31 = vld [vmem:[#allocation2 + $0x60] ss:$8 sps:$4 sm:$0xff]   ;;  %v3337_v32 = vld [vmem:[#allocation2 + $0x54] ss:$8 sps:$4 sm:$0xff]   ;;  %v3339_v33 = vld [vmem:[#allocation2 + $0x50] ss:$8 sps:$4 sm:$0xff]  }
 0x51d   :  { %1425 = vmatpush1.bf16.msra.mxu1 %v3333_v30  ;;  %v3340_v34 = vld [vmem:[#allocation2 + $0x44] ss:$8 sps:$4 sm:$0xff]   ;;  %v3342_v35 = vld [vmem:[#allocation2 + $0x40] ss:$8 sps:$4 sm:$0xff]   ;;  %v3343_v36 = vld [vmem:[#allocation2 + $0x34] ss:$8 sps:$4 sm:$0xff]  }
 0x51e   :  { %1426 = vmatprep.subr.bf16.mxu1 %v3334_v54  ;;  %v3345_v37 = vld [vmem:[#allocation2 + $0x30] ss:$8 sps:$4 sm:$0xff]   ;;  %v3346_v38 = vld [vmem:[#allocation2 + $0x24] ss:$8 sps:$4 sm:$0xff]   ;;  %v3348_v39 = vld [vmem:[#allocation2 + $0x20] ss:$8 sps:$4 sm:$0xff]  }
 0x51f   :  { %v3349_v40 = vld [vmem:[#allocation2 + $0x14] ss:$8 sps:$4 sm:$0xff]   ;;  %v3351_v41 = vld [vmem:[#allocation2 + $0x10] ss:$8 sps:$4 sm:$0xff]   ;;  %v3352_v42 = vld [vmem:[#allocation2 + $0x4] ss:$8 sps:$4 sm:$0xff]  }
 0x520   :  { %v3354_v43 = vld [vmem:[#allocation2] ss:$8 sps:$4 sm:$0xff]   ;;  %v3355_v44 = vld [vmem:[#allocation2 + $0xf4] ss:$8 sps:$4 sm:$0xff]   ;;  %v3357_v45 = vld [vmem:[#allocation2 + $0xf0] ss:$8 sps:$4 sm:$0xff]  }
 0x521   :  { %1427 = vmatpush1.bf16.msra.mxu1 %v3336_v31  ;;  %v3358_v46 = vld [vmem:[#allocation2 + $0xe4] ss:$8 sps:$4 sm:$0xff]   ;;  %v3360_v47 = vld [vmem:[#allocation2 + $0xe0] ss:$8 sps:$4 sm:$0xff]   ;;  %v3361_v48 = vld [vmem:[#allocation2 + $0xd4] ss:$8 sps:$4 sm:$0xff]  }
 0x522   :  { %1428 = vmatprep.subr.bf16.mxu1 %v3337_v32  ;;  %v3363_v49 = vld [vmem:[#allocation2 + $0xd0] ss:$8 sps:$4 sm:$0xff]   ;;  %v3364_v50 = vld [vmem:[#allocation2 + $0xc4] ss:$8 sps:$4 sm:$0xff]   ;;  %v3366_v52 = vld [vmem:[#allocation2 + $0xc0] ss:$8 sps:$4 sm:$0xff]  }
 0x523   :  { %v3367_v53 = vld [vmem:[#allocation2 + $0xb4] ss:$8 sps:$4 sm:$0xff]   ;;  %v3369_v55 = vld [vmem:[#allocation2 + $0xb0] ss:$8 sps:$4 sm:$0xff]   ;;  %v3370_v16 = vld [vmem:[#allocation2 + $0xa4] ss:$8 sps:$4 sm:$0xff]  }
 0x524   :  { %v3372_v56 = vld [vmem:[#allocation2 + $0xa0] ss:$8 sps:$4 sm:$0xff]   ;;  %v3373_v19 = vld [vmem:[#allocation2 + $0x94] ss:$8 sps:$4 sm:$0xff]   ;;  %v3375_v57 = vld [vmem:[#allocation2 + $0x90] ss:$8 sps:$4 sm:$0xff]  }
 0x525   :  { %1429 = vmatpush1.bf16.msra.mxu1 %v3339_v33  ;;  %v3376_v58 = vld [vmem:[#allocation2 + $0x84] ss:$8 sps:$4 sm:$0xff]   ;;  %v3378_v59 = vld [vmem:[#allocation2 + $0x80] ss:$8 sps:$4 sm:$0xff]  }
 0x526   :  { %1430 = vmatprep.subr.bf16.mxu1 %v3340_v34 }
 0x529   :  { %1431 = vmatpush1.bf16.msra.mxu1 %v3342_v35 }
 0x52a   :  { %1432 = vmatprep.subr.bf16.mxu1 %v3343_v36 }
 0x52d   :  { %1433 = vmatpush1.bf16.msra.mxu1 %v3345_v37 }
 0x52e   :  { %1434 = vmatprep.subr.bf16.mxu1 %v3346_v38 }
 0x531   :  { %1435 = vmatpush1.bf16.msra.mxu1 %v3348_v39 }
 0x532   :  { %1436 = vmatprep.subr.bf16.mxu1 %v3349_v40 }
 0x535   :  { %1437 = vmatpush1.bf16.msra.mxu1 %v3351_v41 }
 0x536   :  { %1438 = vmatprep.subr.bf16.mxu1 %v3352_v42 }
 0x539   :  { %1439 = vmatpush1.bf16.msra.mxu1 %v3354_v43 }
 0x53a   :  { %1440 = vmatprep.subr.bf16.mxu1 %v3355_v44 }
 0x53d   :  { %1441 = vmatpush2.bf16.msra.mxu1 %v3357_v45 }
 0x53e   :  { %1442 = vmatprep.subr.bf16.mxu1 %v3358_v46 }
 0x541   :  { %1443 = vmatpush2.bf16.msra.mxu1 %v3360_v47 }
 0x542   :  { %1444 = vmatprep.subr.bf16.mxu1 %v3361_v48 }
 0x545   :  { %1445 = vmatpush2.bf16.msra.mxu1 %v3363_v49 }
 0x546   :  { %1446 = vmatprep.subr.bf16.mxu1 %v3364_v50 }
 0x549   :  { %1447 = vmatpush2.bf16.msra.mxu1 %v3366_v52 }
 0x54a   :  { %1448 = vmatprep.subr.bf16.mxu1 %v3367_v53 }
 0x54d   :  { %1449 = vmatpush2.bf16.msra.mxu1 %v3369_v55 }
 0x54e   :  { %1450 = vmatprep.subr.bf16.mxu1 %v3370_v16 }
 0x551   :  { %1451 = vmatpush2.bf16.msra.mxu1 %v3372_v56 }
 0x552   :  { %1452 = vmatprep.subr.bf16.mxu1 %v3373_v19 }
 0x555   :  { %1453 = vmatpush2.bf16.msra.mxu1 %v3375_v57 }
 0x556   :  { %1454 = vmatprep.subr.bf16.mxu1 %v3376_v58 }
 0x559   :  { %1455 = vmatpush2.bf16.msra.mxu1 %v3378_v59 }
 0x55c   :  { %1457 = vmatmul.mubr.bf16.vlgmr.msra.gmra.mxu1 %v1217_v60 }
 0x61c   :  { %v1458_v1 = vpop.f32.mrf.mxu1 }
 0x61d   :  { %v4037_v2 = vadd.f32 %v1458_v1, %v1257_v62 }
 0x61e   :  { %v1460_v3 = vpop.f32.mrf.mxu1 }
 0x61f   :  { %v1465_v4 = vmax.f32 %v4037_v2, 0.0  ;;  %v1461_v5 = vadd.f32 %v1460_v3, %v1261_v63 }
 0x620   :  { %v1462_v6 = vpop.f32.mrf.mxu1 }
 0x621   :  { %v1466_v9 = vmax.f32 %v1461_v5, 0.0 }
 0x622   :  { %v1463_v11 = vpop.f32.mrf.mxu1 }
 0x623   :  { %3809 = dma.done.wait [#allocation3 + $0x1], 4096 }
 0x624   :  { %3810 = vsyncadd [#allocation3 + $0x1], 4294963200  ;;  %s1469_s20 = scalar_lea.hbm %s4113_s3, 24576  ;;  %v1482_v12 = vpack.c.bf16 %v1466_v9, %v1466_v9 }
 0x625   :  { %3772 = shalt.err (!%p3907_p9)  }
 0x626   :  { %1480 = dma.hbm_to_vmem [thread:$0]  %s1469_s20, 4096, %s3898_s26, [#allocation3]  ;;  %1720 = vmatprep.mubr.bf16.mxu0 %v1482_v12  ;;  %v1481_v47 = vpack.c.bf16 %v1465_v4, %v1465_v4  ;;  %v2948_v48 = vld [vmem:[%s4114_s4 + $0x5] ss:$8 sm:$0x3] }
 0x627   :  { %v3379_v13 = vld [vmem:[#allocation2 + $0x174] ss:$8 sps:$4 sm:$0xff]   ;;  %v3381_v14 = vld [vmem:[#allocation2 + $0x170] ss:$8 sps:$4 sm:$0xff]   ;;  %v3382_v15 = vld [vmem:[#allocation2 + $0x164] ss:$8 sps:$4 sm:$0xff]   ;;  %v1521_v49 = vrot.slane %v2948_v48, %v3920_v8  ;;  %v1525_v50 = vrot.slane %v2948_v48, %v3926_v10 }
 0x628   :  { %1688 = vmatprep.subr.bf16.mxu0 %v3379_v13  ;;  %v3384_v17 = vld [vmem:[#allocation2 + $0x160] ss:$8 sps:$4 sm:$0xff]   ;;  %v3385_v18 = vld [vmem:[#allocation2 + $0x154] ss:$8 sps:$4 sm:$0xff]   ;;  %v3387_v20 = vld [vmem:[#allocation2 + $0x150] ss:$8 sps:$4 sm:$0xff]  }
 0x629   :  { %1689 = vmatpush1.bf16.msra.mxu0 %v3381_v14  ;;  %v3388_v21 = vld [vmem:[#allocation2 + $0x144] ss:$8 sps:$4 sm:$0xff]   ;;  %v3390_v22 = vld [vmem:[#allocation2 + $0x140] ss:$8 sps:$4 sm:$0xff]   ;;  %v3391_v23 = vld [vmem:[#allocation2 + $0x134] ss:$8 sps:$4 sm:$0xff]  }
 0x62a   :  { %1690 = vmatprep.subr.bf16.mxu0 %v3382_v15  ;;  %v3393_v24 = vld [vmem:[#allocation2 + $0x130] ss:$8 sps:$4 sm:$0xff]   ;;  %v3394_v26 = vld [vmem:[#allocation2 + $0x124] ss:$8 sps:$4 sm:$0xff]   ;;  %v3396_v27 = vld [vmem:[#allocation2 + $0x120] ss:$8 sps:$4 sm:$0xff]  }
 0x62b   :  { %v3397_v29 = vld [vmem:[#allocation2 + $0x114] ss:$8 sps:$4 sm:$0xff]   ;;  %v3399_v51 = vld [vmem:[#allocation2 + $0x110] ss:$8 sps:$4 sm:$0xff]   ;;  %v3400_v30 = vld [vmem:[#allocation2 + $0x104] ss:$8 sps:$4 sm:$0xff]  }
 0x62c   :  { %v3402_v54 = vld [vmem:[#allocation2 + $0x100] ss:$8 sps:$4 sm:$0xff]   ;;  %v3403_v31 = vld [vmem:[#allocation2 + $0x1f4] ss:$8 sps:$4 sm:$0xff]   ;;  %v3405_v32 = vld [vmem:[#allocation2 + $0x1f0] ss:$8 sps:$4 sm:$0xff]  }
 0x62d   :  { %1691 = vmatpush1.bf16.msra.mxu0 %v3384_v17  ;;  %v3406_v33 = vld [vmem:[#allocation2 + $0x1e4] ss:$8 sps:$4 sm:$0xff]   ;;  %v3408_v34 = vld [vmem:[#allocation2 + $0x1e0] ss:$8 sps:$4 sm:$0xff]   ;;  %v3409_v35 = vld [vmem:[#allocation2 + $0x1d4] ss:$8 sps:$4 sm:$0xff]  }
 0x62e   :  { %1692 = vmatprep.subr.bf16.mxu0 %v3385_v18  ;;  %v3411_v36 = vld [vmem:[#allocation2 + $0x1d0] ss:$8 sps:$4 sm:$0xff]   ;;  %v3412_v37 = vld [vmem:[#allocation2 + $0x1c4] ss:$8 sps:$4 sm:$0xff]   ;;  %v3414_v38 = vld [vmem:[#allocation2 + $0x1c0] ss:$8 sps:$4 sm:$0xff]  }
 0x62f   :  { %v3415_v39 = vld [vmem:[#allocation2 + $0x1b4] ss:$8 sps:$4 sm:$0xff]   ;;  %v3417_v40 = vld [vmem:[#allocation2 + $0x1b0] ss:$8 sps:$4 sm:$0xff]   ;;  %v3418_v41 = vld [vmem:[#allocation2 + $0x1a4] ss:$8 sps:$4 sm:$0xff]  }
 0x630   :  { %v3420_v42 = vld [vmem:[#allocation2 + $0x1a0] ss:$8 sps:$4 sm:$0xff]   ;;  %v3421_v43 = vld [vmem:[#allocation2 + $0x194] ss:$8 sps:$4 sm:$0xff]   ;;  %v3423_v44 = vld [vmem:[#allocation2 + $0x190] ss:$8 sps:$4 sm:$0xff]  }
 0x631   :  { %1693 = vmatpush1.bf16.msra.mxu0 %v3387_v20  ;;  %v3424_v45 = vld [vmem:[#allocation2 + $0x184] ss:$8 sps:$4 sm:$0xff]   ;;  %v3426_v46 = vld [vmem:[#allocation2 + $0x180] ss:$8 sps:$4 sm:$0xff]  }
 0x632   :  { %1694 = vmatprep.subr.bf16.mxu0 %v3388_v21 }
 0x635   :  { %1695 = vmatpush1.bf16.msra.mxu0 %v3390_v22 }
 0x636   :  { %1696 = vmatprep.subr.bf16.mxu0 %v3391_v23 }
 0x639   :  { %1697 = vmatpush1.bf16.msra.mxu0 %v3393_v24 }
 0x63a   :  { %1698 = vmatprep.subr.bf16.mxu0 %v3394_v26 }
 0x63d   :  { %1699 = vmatpush1.bf16.msra.mxu0 %v3396_v27 }
 0x63e   :  { %1700 = vmatprep.subr.bf16.mxu0 %v3397_v29 }
 0x641   :  { %1701 = vmatpush1.bf16.msra.mxu0 %v3399_v51 }
 0x642   :  { %1702 = vmatprep.subr.bf16.mxu0 %v3400_v30 }
 0x645   :  { %1703 = vmatpush1.bf16.msra.mxu0 %v3402_v54 }
 0x646   :  { %1704 = vmatprep.subr.bf16.mxu0 %v3403_v31 }
 0x649   :  { %1705 = vmatpush2.bf16.msra.mxu0 %v3405_v32 }
 0x64a   :  { %1706 = vmatprep.subr.bf16.mxu0 %v3406_v33 }
 0x64d   :  { %1707 = vmatpush2.bf16.msra.mxu0 %v3408_v34 }
 0x64e   :  { %1708 = vmatprep.subr.bf16.mxu0 %v3409_v35 }
 0x651   :  { %1709 = vmatpush2.bf16.msra.mxu0 %v3411_v36 }
 0x652   :  { %1710 = vmatprep.subr.bf16.mxu0 %v3412_v37 }
 0x655   :  { %1711 = vmatpush2.bf16.msra.mxu0 %v3414_v38 }
 0x656   :  { %1712 = vmatprep.subr.bf16.mxu0 %v3415_v39 }
 0x659   :  { %1713 = vmatpush2.bf16.msra.mxu0 %v3417_v40 }
 0x65a   :  { %1714 = vmatprep.subr.bf16.mxu0 %v3418_v41 }
 0x65d   :  { %1715 = vmatpush2.bf16.msra.mxu0 %v3420_v42 }
 0x65e   :  { %1716 = vmatprep.subr.bf16.mxu0 %v3421_v43 }
 0x661   :  { %1717 = vmatpush2.bf16.msra.mxu0 %v3423_v44 }
 0x662   :  { %1718 = vmatprep.subr.bf16.mxu0 %v3424_v45 }
 0x665   :  { %1719 = vmatpush2.bf16.msra.mxu0 %v3426_v46 }
 0x668   :  { %1721 = vmatmul.mubr.bf16.vlgmr.msra.gmra.mxu0 %v1481_v47 }
 0x728   :  { %v1722_v52 = vpop.f32.mrf.mxu0 }
 0x729   :  { %v1723_v53 = vadd.f32 %v1722_v52, %v1521_v49 }
 0x72a   :  { %v1724_v55 = vpop.f32.mrf.mxu0 }
 0x72b   :  { %v1729_v16 = vmax.f32 %v1723_v53, 0.0  ;;  %v1725_v56 = vadd.f32 %v1724_v55, %v1525_v50 }
 0x72c   :  { %v1726_v19 = vpop.f32.mrf.mxu0 }
 0x72d   :  { %v4055_v57 = vadd.f32 %v1729_v16, %v4017_v25  ;;  %v1730_v58 = vmax.f32 %v1725_v56, 0.0 }
 0x72e   :  { %v1727_v59 = vpop.f32.mrf.mxu0 }
 0x72f   :  { %v4058_v60 = vadd.f32 %v1730_v58, %v4020_v28 }
 0x730   :  { %3811 = dma.done.wait [#allocation3], 4096 }
 0x731   :  { %3812 = vsyncadd [#allocation3], 4294963200  ;;  %s1735_s22 = scalar_lea.hbm %s4113_s3, 28672  ;;  %v1748_v61 = vpack.c.bf16 %v4058_v60, %v4058_v60 }
 0x732   :  { %3795 = shalt.err (!%p3947_p0)  }
 0x733   :  { %1746 = dma.hbm_to_vmem [thread:$0]  %s1735_s22, 4096, %s3939_s14, [#allocation3 + $0x1]  ;;  %1986 = vmatprep.mubr.bf16.mxu1 %v1748_v61  ;;  %v1747_v34 = vpack.c.bf16 %v4055_v57, %v4055_v57  ;;  %v2981_v35 = vld [vmem:[%s4114_s4 + $0x6] ss:$8 sm:$0x3] }
 0x734   :  { %v3427_v25 = vld [vmem:[#allocation2 + $0x74] ss:$8 sps:$4 sm:$0xff]   ;;  %v3429_v62 = vld [vmem:[#allocation2 + $0x70] ss:$8 sps:$4 sm:$0xff]   ;;  %v3430_v28 = vld [vmem:[#allocation2 + $0x64] ss:$8 sps:$4 sm:$0xff]   ;;  %v1787_v36 = vrot.slane %v2981_v35, %v3920_v8  ;;  %v1791_v37 = vrot.slane %v2981_v35, %v3926_v10 }
 0x735   :  { %1954 = vmatprep.subr.bf16.mxu1 %v3427_v25  ;;  %v3432_v63 = vld [vmem:[#allocation2 + $0x60] ss:$8 sps:$4 sm:$0xff]   ;;  %v3433_v1 = vld [vmem:[#allocation2 + $0x54] ss:$8 sps:$4 sm:$0xff]   ;;  %v3435_v2 = vld [vmem:[#allocation2 + $0x50] ss:$8 sps:$4 sm:$0xff]  }
 0x736   :  { %1955 = vmatpush1.bf16.msra.mxu1 %v3429_v62  ;;  %v3436_v3 = vld [vmem:[#allocation2 + $0x44] ss:$8 sps:$4 sm:$0xff]   ;;  %v3438_v4 = vld [vmem:[#allocation2 + $0x40] ss:$8 sps:$4 sm:$0xff]   ;;  %v3439_v5 = vld [vmem:[#allocation2 + $0x34] ss:$8 sps:$4 sm:$0xff]  }
 0x737   :  { %1956 = vmatprep.subr.bf16.mxu1 %v3430_v28  ;;  %v3441_v6 = vld [vmem:[#allocation2 + $0x30] ss:$8 sps:$4 sm:$0xff]   ;;  %v3442_v9 = vld [vmem:[#allocation2 + $0x24] ss:$8 sps:$4 sm:$0xff]   ;;  %v3444_v11 = vld [vmem:[#allocation2 + $0x20] ss:$8 sps:$4 sm:$0xff]  }
 0x738   :  { %v3445_v12 = vld [vmem:[#allocation2 + $0x14] ss:$8 sps:$4 sm:$0xff]   ;;  %v3447_v13 = vld [vmem:[#allocation2 + $0x10] ss:$8 sps:$4 sm:$0xff]   ;;  %v3448_v14 = vld [vmem:[#allocation2 + $0x4] ss:$8 sps:$4 sm:$0xff]  }
 0x739   :  { %v3450_v15 = vld [vmem:[#allocation2] ss:$8 sps:$4 sm:$0xff]   ;;  %v3451_v17 = vld [vmem:[#allocation2 + $0xf4] ss:$8 sps:$4 sm:$0xff]   ;;  %v3453_v18 = vld [vmem:[#allocation2 + $0xf0] ss:$8 sps:$4 sm:$0xff]  }
 0x73a   :  { %1957 = vmatpush1.bf16.msra.mxu1 %v3432_v63  ;;  %v3454_v20 = vld [vmem:[#allocation2 + $0xe4] ss:$8 sps:$4 sm:$0xff]   ;;  %v3456_v21 = vld [vmem:[#allocation2 + $0xe0] ss:$8 sps:$4 sm:$0xff]   ;;  %v3457_v22 = vld [vmem:[#allocation2 + $0xd4] ss:$8 sps:$4 sm:$0xff]  }
 0x73b   :  { %1958 = vmatprep.subr.bf16.mxu1 %v3433_v1  ;;  %v3459_v23 = vld [vmem:[#allocation2 + $0xd0] ss:$8 sps:$4 sm:$0xff]   ;;  %v3460_v24 = vld [vmem:[#allocation2 + $0xc4] ss:$8 sps:$4 sm:$0xff]   ;;  %v3462_v26 = vld [vmem:[#allocation2 + $0xc0] ss:$8 sps:$4 sm:$0xff]  }
 0x73c   :  { %v3463_v27 = vld [vmem:[#allocation2 + $0xb4] ss:$8 sps:$4 sm:$0xff]   ;;  %v3465_v29 = vld [vmem:[#allocation2 + $0xb0] ss:$8 sps:$4 sm:$0xff]   ;;  %v3466_v51 = vld [vmem:[#allocation2 + $0xa4] ss:$8 sps:$4 sm:$0xff]  }
 0x73d   :  { %v3468_v30 = vld [vmem:[#allocation2 + $0xa0] ss:$8 sps:$4 sm:$0xff]   ;;  %v3469_v54 = vld [vmem:[#allocation2 + $0x94] ss:$8 sps:$4 sm:$0xff]   ;;  %v3471_v31 = vld [vmem:[#allocation2 + $0x90] ss:$8 sps:$4 sm:$0xff]  }
 0x73e   :  { %1959 = vmatpush1.bf16.msra.mxu1 %v3435_v2  ;;  %v3472_v32 = vld [vmem:[#allocation2 + $0x84] ss:$8 sps:$4 sm:$0xff]   ;;  %v3474_v33 = vld [vmem:[#allocation2 + $0x80] ss:$8 sps:$4 sm:$0xff]  }
 0x73f   :  { %1960 = vmatprep.subr.bf16.mxu1 %v3436_v3 }
 0x742   :  { %1961 = vmatpush1.bf16.msra.mxu1 %v3438_v4 }
 0x743   :  { %1962 = vmatprep.subr.bf16.mxu1 %v3439_v5 }
 0x746   :  { %1963 = vmatpush1.bf16.msra.mxu1 %v3441_v6 }
 0x747   :  { %1964 = vmatprep.subr.bf16.mxu1 %v3442_v9 }
 0x74a   :  { %1965 = vmatpush1.bf16.msra.mxu1 %v3444_v11 }
 0x74b   :  { %1966 = vmatprep.subr.bf16.mxu1 %v3445_v12 }
 0x74e   :  { %1967 = vmatpush1.bf16.msra.mxu1 %v3447_v13 }
 0x74f   :  { %1968 = vmatprep.subr.bf16.mxu1 %v3448_v14 }
 0x752   :  { %1969 = vmatpush1.bf16.msra.mxu1 %v3450_v15 }
 0x753   :  { %1970 = vmatprep.subr.bf16.mxu1 %v3451_v17 }
 0x756   :  { %1971 = vmatpush2.bf16.msra.mxu1 %v3453_v18 }
 0x757   :  { %1972 = vmatprep.subr.bf16.mxu1 %v3454_v20 }
 0x75a   :  { %1973 = vmatpush2.bf16.msra.mxu1 %v3456_v21 }
 0x75b   :  { %1974 = vmatprep.subr.bf16.mxu1 %v3457_v22 }
 0x75e   :  { %1975 = vmatpush2.bf16.msra.mxu1 %v3459_v23 }
 0x75f   :  { %1976 = vmatprep.subr.bf16.mxu1 %v3460_v24 }
 0x762   :  { %1977 = vmatpush2.bf16.msra.mxu1 %v3462_v26 }
 0x763   :  { %1978 = vmatprep.subr.bf16.mxu1 %v3463_v27 }
 0x766   :  { %1979 = vmatpush2.bf16.msra.mxu1 %v3465_v29 }
 0x767   :  { %1980 = vmatprep.subr.bf16.mxu1 %v3466_v51 }
 0x76a   :  { %1981 = vmatpush2.bf16.msra.mxu1 %v3468_v30 }
 0x76b   :  { %1982 = vmatprep.subr.bf16.mxu1 %v3469_v54 }
 0x76e   :  { %1983 = vmatpush2.bf16.msra.mxu1 %v3471_v31 }
 0x76f   :  { %1984 = vmatprep.subr.bf16.mxu1 %v3472_v32 }
 0x772   :  { %1985 = vmatpush2.bf16.msra.mxu1 %v3474_v33 }
 0x775   :  { %1987 = vmatmul.mubr.bf16.vlgmr.msra.gmra.mxu1 %v1747_v34 }
 0x835   :  { %v1988_v38 = vpop.f32.mrf.mxu1 }
 0x836   :  { %v4075_v39 = vadd.f32 %v1988_v38, %v1787_v36 }
 0x837   :  { %v1990_v40 = vpop.f32.mrf.mxu1 }
 0x838   :  { %v1995_v41 = vmax.f32 %v4075_v39, 0.0  ;;  %v1991_v42 = vadd.f32 %v1990_v40, %v1791_v37 }
 0x839   :  { %v1992_v43 = vpop.f32.mrf.mxu1 }
 0x83a   :  { %v1996_v44 = vmax.f32 %v1991_v42, 0.0 }
 0x83b   :  { %v1993_v45 = vpop.f32.mrf.mxu1 }
 0x83c   :  { %3813 = dma.done.wait [#allocation3 + $0x1], 4096 }
 0x83d   :  { %3814 = vsyncadd [#allocation3 + $0x1], 4294963200  ;;  %v2000_v46 = vpack.c.bf16 %v1996_v44, %v1996_v44  ;;  %3475 = vset.pattern.permute.xlu0 %v3818_v0  ;;  %v3484_v47 = vld [vmem:[#allocation2 + $0x174] ss:$8 sps:$4 sm:$0xff]   ;;  %v3486_v48 = vld [vmem:[#allocation2 + $0x170] ss:$8 sps:$4 sm:$0xff]   ;;  %v1999_v45 = vpack.c.bf16 %v1995_v41, %v1995_v41 }
 0x83e   :  { %2206 = vmatprep.subr.bf16.mxu0 %v3484_v47  ;;  %v3487_v49 = vld [vmem:[#allocation2 + $0x164] ss:$8 sps:$4 sm:$0xff]   ;;  %v3489_v50 = vld [vmem:[#allocation2 + $0x160] ss:$8 sps:$4 sm:$0xff]   ;;  %v3490_v52 = vld [vmem:[#allocation2 + $0x154] ss:$8 sps:$4 sm:$0xff]  }
 0x83f   :  { %2238 = vmatprep.mubr.bf16.mxu0 %v2000_v46  ;;  %2207 = vmatpush1.bf16.msra.mxu0 %v3486_v48  ;;  %v3492_v53 = vld [vmem:[#allocation2 + $0x150] ss:$8 sps:$4 sm:$0xff]   ;;  %v3493_v55 = vld [vmem:[#allocation2 + $0x144] ss:$8 sps:$4 sm:$0xff]   ;;  %v3495_v16 = vld [vmem:[#allocation2 + $0x140] ss:$8 sps:$4 sm:$0xff]  }
 0x840   :  { %2208 = vmatprep.subr.bf16.mxu0 %v3487_v49  ;;  %v3496_v56 = vld [vmem:[#allocation2 + $0x134] ss:$8 sps:$4 sm:$0xff]   ;;  %v3498_v19 = vld [vmem:[#allocation2 + $0x130] ss:$8 sps:$4 sm:$0xff]   ;;  %v3499_v0 = vld [vmem:[#allocation2 + $0x124] ss:$8 sps:$4 sm:$0xff]  }
 0x841   :  { %v3501_v58 = vld [vmem:[#allocation2 + $0x120] ss:$8 sps:$4 sm:$0xff]   ;;  %v3502_v59 = vld [vmem:[#allocation2 + $0x114] ss:$8 sps:$4 sm:$0xff]   ;;  %v3532_v61 = vld [vmem:[#allocation4 + $0xac] ss:$12 sps:$4 sm:$0xff]  }
 0x842   :  { %v3534_v25 = vld [vmem:[#allocation4 + $0xa8] ss:$12 sps:$4 sm:$0xff]   ;;  %v3504_v62 = vld [vmem:[#allocation2 + $0x110] ss:$8 sps:$4 sm:$0xff]   ;;  %v3505_v63 = vld [vmem:[#allocation2 + $0x104] ss:$8 sps:$4 sm:$0xff]   ;;  %2590 = vmatprep.subr.bf16.mxu1 %v3532_v61 }
 0x843   :  { %2209 = vmatpush1.bf16.msra.mxu0 %v3489_v50  ;;  %v3535_v28 = vld [vmem:[#allocation4 + $0x94] ss:$12 sps:$4 sm:$0xff]   ;;  %2591 = vmatpush1.bf16.msra.mxu1 %v3534_v25  ;;  %v3537_v1 = vld [vmem:[#allocation4 + $0x90] ss:$12 sps:$4 sm:$0xff]   ;;  %v3540_v5 = vld [vmem:[#allocation4 + $0x78] ss:$12 sps:$4 sm:$0xff]  }
 0x844   :  { %2210 = vmatprep.subr.bf16.mxu0 %v3490_v52  ;;  %2592 = vmatprep.subr.bf16.mxu1 %v3535_v28  ;;  %v3538_v2 = vld [vmem:[#allocation4 + $0x7c] ss:$12 sps:$4 sm:$0xff]   ;;  %v3541_v6 = vld [vmem:[#allocation4 + $0x64] ss:$12 sps:$4 sm:$0xff]   ;;  %v3543_v12 = vld [vmem:[#allocation4 + $0x60] ss:$12 sps:$4 sm:$0xff]  }
 0x845   :  { %v3507_v3 = vld [vmem:[#allocation2 + $0x100] ss:$8 sps:$4 sm:$0xff]   ;;  %v3508_v4 = vld [vmem:[#allocation2 + $0x1f4] ss:$8 sps:$4 sm:$0xff]   ;;  %v3510_v9 = vld [vmem:[#allocation2 + $0x1f0] ss:$8 sps:$4 sm:$0xff]  }
 0x846   :  { %v3511_v11 = vld [vmem:[#allocation2 + $0x1e4] ss:$8 sps:$4 sm:$0xff]   ;;  %v3513_v14 = vld [vmem:[#allocation2 + $0x1e0] ss:$8 sps:$4 sm:$0xff]   ;;  %v3514_v15 = vld [vmem:[#allocation2 + $0x1d4] ss:$8 sps:$4 sm:$0xff]  }
 0x847   :  { %2211 = vmatpush1.bf16.msra.mxu0 %v3492_v53  ;;  %2593 = vmatpush1.bf16.msra.mxu1 %v3537_v1  ;;  %v3544_v13 = vld [vmem:[#allocation4 + $0x4c] ss:$12 sps:$4 sm:$0xff]   ;;  %v3546_v17 = vld [vmem:[#allocation4 + $0x48] ss:$12 sps:$4 sm:$0xff]   ;;  %v3549_v22 = vld [vmem:[#allocation4 + $0x30] ss:$12 sps:$4 sm:$0xff]  }
 0x848   :  { %2212 = vmatprep.subr.bf16.mxu0 %v3493_v55  ;;  %2594 = vmatprep.subr.bf16.mxu1 %v3538_v2  ;;  %v3547_v18 = vld [vmem:[#allocation4 + $0x34] ss:$12 sps:$4 sm:$0xff]   ;;  %v3516_v20 = vld [vmem:[#allocation2 + $0x1d0] ss:$8 sps:$4 sm:$0xff]   ;;  %v3517_v21 = vld [vmem:[#allocation2 + $0x1c4] ss:$8 sps:$4 sm:$0xff]  }
 0x849   :  { %v3550_v23 = vld [vmem:[#allocation4 + $0x1c] ss:$12 sps:$4 sm:$0xff]   ;;  %v3552_v27 = vld [vmem:[#allocation4 + $0x18] ss:$12 sps:$4 sm:$0xff]   ;;  %v3555_v54 = vld [vmem:[#allocation4] ss:$12 sps:$4 sm:$0xff]  }
 0x84a   :  { %v3519_v24 = vld [vmem:[#allocation2 + $0x1c0] ss:$8 sps:$4 sm:$0xff]   ;;  %v3520_v26 = vld [vmem:[#allocation2 + $0x1b4] ss:$8 sps:$4 sm:$0xff]   ;;  %v3553_v29 = vld [vmem:[#allocation4 + $0x4] ss:$12 sps:$4 sm:$0xff]  }
 0x84b   :  { %2213 = vmatpush1.bf16.msra.mxu0 %v3495_v16  ;;  %2595 = vmatpush1.bf16.msra.mxu1 %v3540_v5  ;;  %v3522_v51 = vld [vmem:[#allocation2 + $0x1b0] ss:$8 sps:$4 sm:$0xff]   ;;  %v3523_v30 = vld [vmem:[#allocation2 + $0x1a4] ss:$8 sps:$4 sm:$0xff]   ;;  %v3525_v31 = vld [vmem:[#allocation2 + $0x1a0] ss:$8 sps:$4 sm:$0xff]  }
 0x84c   :  { %2214 = vmatprep.subr.bf16.mxu0 %v3496_v56  ;;  %2596 = vmatprep.subr.bf16.mxu1 %v3541_v6  ;;  %v3556_v32 = vld [vmem:[#allocation4 + $0x16c] ss:$12 sps:$4 sm:$0xff]   ;;  %v3526_v33 = vld [vmem:[#allocation2 + $0x194] ss:$8 sps:$4 sm:$0xff]   ;;  %v3531_v42 = vld [vmem:[#allocation2 + $0x180] ss:$8 sps:$4 sm:$0xff]  }
 0x84d   :  { %v3559_v34 = vld [vmem:[#allocation4 + $0x168] ss:$12 sps:$4 sm:$0xff]   ;;  %v3528_v36 = vld [vmem:[#allocation2 + $0x190] ss:$8 sps:$4 sm:$0xff]   ;;  %v3529_v37 = vld [vmem:[#allocation2 + $0x184] ss:$8 sps:$4 sm:$0xff]  }
 0x84e   :  { %v3561_v35 = vld [vmem:[#allocation4 + $0x154] ss:$12 sps:$4 sm:$0xff]   ;;  %v3564_v38 = vld [vmem:[#allocation4 + $0x150] ss:$12 sps:$4 sm:$0xff]   ;;  %v3569_v44 = vld [vmem:[#allocation4 + $0x138] ss:$12 sps:$4 sm:$0xff]  }
 0x84f   :  { %2215 = vmatpush1.bf16.msra.mxu0 %v3498_v19  ;;  %2597 = vmatpush1.bf16.msra.mxu1 %v3543_v12  ;;  %v3566_v40 = vld [vmem:[#allocation4 + $0x13c] ss:$12 sps:$4 sm:$0xff]   ;;  %v3571_v46 = vld [vmem:[#allocation4 + $0x124] ss:$12 sps:$4 sm:$0xff]   ;;  %v3574_v49 = vld [vmem:[#allocation4 + $0x120] ss:$12 sps:$4 sm:$0xff]  }
 0x850   :  { %2216 = vmatprep.subr.bf16.mxu0 %v3499_v0  ;;  %2598 = vmatprep.subr.bf16.mxu1 %v3544_v13  ;;  %v3558_v43 = vld [vmem:[#allocation4 + $0x170] ss:$12 sps:$4 sm:$0xff]   ;;  %v3563_v48 = vld [vmem:[#allocation4 + $0x158] ss:$12 sps:$4 sm:$0xff]   ;;  %v3568_v53 = vld [vmem:[#allocation4 + $0x140] ss:$12 sps:$4 sm:$0xff]  }
 0x851   :  { %v3560_v47 = vld [vmem:[#allocation4 + $0xb0] ss:$12 sps:$4 sm:$0xff]   ;;  %v3576_v50 = vld [vmem:[#allocation4 + $0x10c] ss:$12 sps:$4 sm:$0xff]   ;;  %v3579_v55 = vld [vmem:[#allocation4 + $0x108] ss:$12 sps:$4 sm:$0xff]  }
 0x852   :  { %v3565_v52 = vld [vmem:[#allocation4 + $0x98] ss:$12 sps:$4 sm:$0xff]   ;;  %v3570_v39 = vld [vmem:[#allocation4 + $0x80] ss:$12 sps:$4 sm:$0xff]   ;;  %v3573_v41 = vld [vmem:[#allocation4 + $0x128] ss:$12 sps:$4 sm:$0xff]  }
 0x853   :  { %2217 = vmatpush1.bf16.msra.mxu0 %v3501_v58  ;;  %2599 = vmatpush1.bf16.msra.mxu1 %v3546_v17  ;;  %v3575_v16 = vld [vmem:[#allocation4 + $0x68] ss:$12 sps:$4 sm:$0xff]   ;;  %v3578_v56 = vld [vmem:[#allocation4 + $0x110] ss:$12 sps:$4 sm:$0xff]   ;;  %v3583_v58 = vld [vmem:[#allocation4 + $0xf8] ss:$12 sps:$4 sm:$0xff]  }
 0x854   :  { %2218 = vmatprep.subr.bf16.mxu0 %v3502_v59  ;;  %2600 = vmatprep.subr.bf16.mxu1 %v3547_v18  ;;  %v3580_v19 = vld [vmem:[#allocation4 + $0x50] ss:$12 sps:$4 sm:$0xff]   ;;  %v3581_v0 = vld [vmem:[#allocation4 + $0xf4] ss:$12 sps:$4 sm:$0xff]   ;;  %v3585_v61 = vld [vmem:[#allocation4 + $0x38] ss:$12 sps:$4 sm:$0xff]  }
 0x855   :  { %v3584_v59 = vld [vmem:[#allocation4 + $0xf0] ss:$12 sps:$4 sm:$0xff]   ;;  %v3589_v28 = vld [vmem:[#allocation4 + $0xd8] ss:$12 sps:$4 sm:$0xff]   ;;  %v3593_v2 = vld [vmem:[#allocation4 + $0xc8] ss:$12 sps:$4 sm:$0xff]  }
 0x856   :  { %v3586_v25 = vld [vmem:[#allocation4 + $0xdc] ss:$12 sps:$4 sm:$0xff]   ;;  %v3591_v1 = vld [vmem:[#allocation4 + $0xc4] ss:$12 sps:$4 sm:$0xff]   ;;  %v3821_v6 = vmov 3   ;;  %v3824_v12 = vmov 7  }
 0x857   :  { %2219 = vmatpush1.bf16.msra.mxu0 %v3504_v62  ;;  %2601 = vmatpush1.bf16.msra.mxu1 %v3549_v22  ;;  %v3588_v62 = vld [vmem:[#allocation4 + $0xe0] ss:$12 sps:$4 sm:$0xff]   ;;  %v3825_v13 = vmov 6   ;;  %v3828_v17 = vmov 5  }
 0x858   :  { %2220 = vmatprep.subr.bf16.mxu0 %v3505_v63  ;;  %2602 = vmatprep.subr.bf16.mxu1 %v3550_v23  ;;  %v3590_v63 = vld [vmem:[#allocation4 + $0x20] ss:$12 sps:$4 sm:$0xff]  }
 0x859   :  { %v2671_v5 = vld [vmem:[%s4117_s7] sm:$0xff]  ;;  %3477 = vset.pattern.permute.xlu1 %v3821_v6 }
 0x85a   :  { %2675 = vperm.xlu0 %3475, %v2671_v5   ;;  %2704 = vperm.xlu1 %3477, %v2671_v5   ;;  %v3014_v18 = vld [vmem:[%s4114_s4 + $0x7] ss:$8 sm:$0x3] }
 0x85b   :  { %2221 = vmatpush1.bf16.msra.mxu0 %v3507_v3  ;;  %2603 = vmatpush1.bf16.msra.mxu1 %v3552_v27  ;;  %v3594_v3 = vld [vmem:[#allocation4 + $0xc0] ss:$12 sps:$4 sm:$0xff]  }
 0x85c   :  { %2222 = vmatprep.subr.bf16.mxu0 %v3508_v4  ;;  %2604 = vmatprep.subr.bf16.mxu1 %v3553_v29  ;;  %v3595_v4 = vld [vmem:[#allocation4 + $0x8] ss:$12 sps:$4 sm:$0xff]  }
 0x85f   :  { %2223 = vmatpush2.bf16.msra.mxu0 %v3510_v9  ;;  %2605 = vmatpush1.bf16.msra.mxu1 %v3555_v54  ;;  %v3822_v9 = vmov 1  }
 0x860   :  { %2224 = vmatprep.subr.bf16.mxu0 %v3511_v11  ;;  %2606 = vmatprep.subr.bf16.mxu1 %v3556_v32  ;;  %v3823_v11 = vmov 4  }
 0x861   :  { %3476 = vset.pattern.permute.xlu0 %v3822_v9  ;;  %3478 = vset.pattern.permute.xlu1 %v3823_v11 }
 0x862   :  { %2680 = vperm.xlu0 %3476, %v2671_v5   ;;  %2709 = vperm.xlu1 %3478, %v2671_v5  }
 0x863   :  { %2225 = vmatpush2.bf16.msra.mxu0 %v3513_v14  ;;  %2607 = vmatpush2.bf16.msra.mxu1 %v3559_v34  ;;  %v3826_v14 = vmov 8  }
 0x864   :  { %2226 = vmatprep.subr.bf16.mxu0 %v3514_v15  ;;  %2608 = vmatprep.subr.bf16.mxu1 %v3561_v35  ;;  %v3827_v15 = vmov 2  }
 0x866   :  { %3480 = vset.pattern.permute.xlu0 %v3824_v12  ;;  %3479 = vset.pattern.permute.xlu1 %v3825_v13 }
 0x867   :  { %2227 = vmatpush2.bf16.msra.mxu0 %v3516_v20  ;;  %2609 = vmatpush2.bf16.msra.mxu1 %v3564_v38  ;;  %v2039_v20 = vrot.slane %v3014_v18, %v3920_v8 }
 0x868   :  { %2228 = vmatprep.subr.bf16.mxu0 %v3517_v21  ;;  %2610 = vmatprep.subr.bf16.mxu1 %v3566_v40  ;;  %v2043_v21 = vrot.slane %v3014_v18, %v3926_v10  ;;  %v2317_v40 = vld [vmem:[%s4116_s6] sm:$0x7] }
 0x869   :  { %2738 = vperm.xlu0 %3480, %v2671_v5   ;;  %2733 = vperm.xlu1 %3479, %v2671_v5  }
 0x86b   :  { %2229 = vmatpush2.bf16.msra.mxu0 %v3519_v24  ;;  %2611 = vmatpush2.bf16.msra.mxu1 %v3569_v44  ;;  %v2326_v44 = vrot.slane %v2317_v40, %v3926_v10 }
 0x86c   :  { %2230 = vmatprep.subr.bf16.mxu0 %v3520_v26  ;;  %2612 = vmatprep.subr.bf16.mxu1 %v3571_v46 }
 0x86d   :  { %3483 = vset.pattern.permute.xlu0 %v3826_v14  ;;  %3481 = vset.pattern.permute.xlu1 %v3827_v15 }
 0x86e   :  { %2744 = vperm.xlu0 %3483, %v2671_v5   ;;  %2686 = vperm.xlu1 %3481, %v2671_v5  }
 0x86f   :  { %2231 = vmatpush2.bf16.msra.mxu0 %v3522_v51  ;;  %2613 = vmatpush2.bf16.msra.mxu1 %v3574_v49 }
 0x870   :  { %2232 = vmatprep.subr.bf16.mxu0 %v3523_v30  ;;  %2614 = vmatprep.subr.bf16.mxu1 %v3576_v50 }
 0x872   :  { %3482 = vset.pattern.permute.xlu1 %v3828_v17 }
 0x873   :  { %2233 = vmatpush2.bf16.msra.mxu0 %v3525_v31  ;;  %2615 = vmatpush2.bf16.msra.mxu1 %v3579_v55 }
 0x874   :  { %2234 = vmatprep.subr.bf16.mxu0 %v3526_v33  ;;  %2616 = vmatprep.subr.bf16.mxu1 %v3581_v0 }
 0x875   :  { %2715 = vperm.xlu1 %3482, %v2671_v5  }
 0x877   :  { %2235 = vmatpush2.bf16.msra.mxu0 %v3528_v36  ;;  %2617 = vmatpush2.bf16.msra.mxu1 %v3584_v59 }
 0x878   :  { %2236 = vmatprep.subr.bf16.mxu0 %v3529_v37  ;;  %2618 = vmatprep.subr.bf16.mxu1 %v3586_v25 }
 0x87b   :  { %2237 = vmatpush2.bf16.msra.mxu0 %v3531_v42  ;;  %2619 = vmatpush2.bf16.msra.mxu1 %v3589_v28  ;;  %v2329_v42 = vsub.s32 2, %v3917_v7 }
 0x87c   :  { %3097 = vmatprep.subr.bf16.mxu0 %v3558_v43  ;;  %2620 = vmatprep.subr.bf16.mxu1 %v3591_v1 }
 0x87d   :  { %v2330_v49 = vrot.slane %v2317_v40, %v2329_v42 }
 0x87e   :  { %2239 = vmatmul.mubr.bf16.vlgmr.msra.gmra.mxu0 %v1999_v45 }
 0x87f   :  { %3098 = vmatpush3.bf16.msra.mxu0 %v3560_v47  ;;  %2621 = vmatpush2.bf16.msra.mxu1 %v3594_v3  ;;  %v2672_v3 = vld [vmem:[%s4118_s8] sm:$0xff] }
 0x880   :  { %3099 = vmatprep.subr.bf16.mxu0 %v3563_v48 }
 0x883   :  { %3100 = vmatpush3.bf16.msra.mxu0 %v3565_v52 }
 0x884   :  { %3101 = vmatprep.subr.bf16.mxu0 %v3568_v53 }
 0x887   :  { %3102 = vmatpush3.bf16.msra.mxu0 %v3570_v39 }
 0x888   :  { %3103 = vmatprep.subr.bf16.mxu0 %v3573_v41 }
 0x88b   :  { %3104 = vmatpush3.bf16.msra.mxu0 %v3575_v16 }
 0x88c   :  { %3105 = vmatprep.subr.bf16.mxu0 %v3578_v56 }
 0x88f   :  { %3106 = vmatpush3.bf16.msra.mxu0 %v3580_v19 }
 0x890   :  { %3107 = vmatprep.subr.bf16.mxu0 %v3583_v58 }
 0x893   :  { %3108 = vmatpush3.bf16.msra.mxu0 %v3585_v61 }
 0x894   :  { %3109 = vmatprep.subr.bf16.mxu0 %v3588_v62 }
 0x897   :  { %3110 = vmatpush3.bf16.msra.mxu0 %v3590_v63 }
 0x898   :  { %3111 = vmatprep.subr.bf16.mxu0 %v3593_v2 }
 0x89b   :  { %3112 = vmatpush3.bf16.msra.mxu0 %v3595_v4 }
 0x8d5   :  { %v2705_v34 = vpop.permute.xlu1 %2704  ;;  %v2676_v36 = vpop.permute.xlu0 %2675 }
 0x8dd   :  { %v2710_v35 = vpop.permute.xlu1 %2709  ;;  %v2681_v38 = vpop.permute.xlu0 %2680 }
 0x8e4   :  { %v2734_v37 = vpop.permute.xlu1 %2733  ;;  %v2739_v43 = vpop.permute.xlu0 %2738 }
 0x8e9   :  { %v2745_v58 = vpop.permute.xlu0 %2744 }
 0x93e   :  { %v2240_v22 = vpop.f32.mrf.mxu0 }
 0x93f   :  { %v2241_v23 = vadd.f32 %v2240_v22, %v2039_v20 }
 0x940   :  { %v2242_v24 = vpop.f32.mrf.mxu0 }
 0x941   :  { %v2247_v26 = vmax.f32 %v2241_v23, 0.0  ;;  %v2243_v27 = vadd.f32 %v2242_v24, %v2043_v21 }
 0x942   :  { %v2244_v29 = vpop.f32.mrf.mxu0 }
 0x943   :  { %v2248_v51 = vmax.f32 %v2243_v27, 0.0  ;;  %v2249_v30 = vadd.f32 %v2247_v26, %v4055_v57  ;;  %v2322_v57 = vrot.slane %v2317_v40, %v3920_v8 }
 0x944   :  { %v2245_v54 = vpop.f32.mrf.mxu0 }
 0x945   :  { %v2250_v31 = vadd.f32 %v2248_v51, %v4058_v60  ;;  %v2251_v33 = vpack.c.bf16 %v2249_v30, %v2249_v30  ;;  %v2687_v60 = vpop.permute.xlu1 %2686 }
 0x947   :  { %v2252_v32 = vpack.c.bf16 %v2250_v31, %v2250_v31 }
 0x949   :  { %2622 = vmatprep.mubr.bf16.mxu1 %v2252_v32  ;;  %2663 = vmatprep.mubr.bf16.mxu0 %v2252_v32  ;;  %v2716_v0 = vpop.permute.xlu1 %2715 }
 0x94a   :  { %2623 = vmatmul.mubr.bf16.vlgmr.msra.gmra.mxu1 %v2251_v33  ;;  %2664 = vmatmul.mubr.bf16.vlgmr.msra.gmra.mxu0 %v2251_v33 }
 0xa0a   :  { %v2624_v45 = vpop.f32.mrf.mxu1  ;;  %v3113_v46 = vpop.f32.mrf.mxu0 }
 0xa0b   :  { %v2625_v47 = vadd.f32 %v2624_v45, %v2322_v57 }
 0xa0c   :  { %v2626_v48 = vpop.f32.mrf.mxu1  ;;  %v3114_v50 = vpop.f32.mrf.mxu0 }
 0xa0d   :  { %v2627_v52 = vadd.f32 %v2626_v48, %v2326_v44  ;;  %v2678_v53 = vmul.f32 %v2676_v36, %v2625_v47  ;;  %v2707_v55 = vmul.f32 %v2705_v34, %v2625_v47  ;;  %v3115_v39 = vadd.f32 %v3114_v50, %v3113_v46 }
 0xa0e   :  { %v2628_v41 = vpop.f32.mrf.mxu1  ;;  %v3116_v16 = vpop.f32.mrf.mxu0  ;;  %v2736_v56 = vmul.f32 %v2734_v37, %v2625_v47 }
 0xa0f   :  { %v2683_v8 = vmul.f32 %v2681_v38, %v2627_v52  ;;  %v2712_v19 = vmul.f32 %v2710_v35, %v2627_v52  ;;  %v2741_v7 = vmul.f32 %v2739_v43, %v2627_v52  ;;  %v2666_v59 = vadd.f32 %v3115_v39, %v2330_v49 }
 0xa10   :  { %v2629_v10 = vpop.f32.mrf.mxu1  ;;  %v3117_v61 = vpop.f32.mrf.mxu0 }
 0xa11   :  { %v2684_v25 = vadd.f32 %v2683_v8, %v2678_v53  ;;  %v2713_v62 = vadd.f32 %v2712_v19, %v2707_v55  ;;  %v2742_v28 = vadd.f32 %v2741_v7, %v2736_v56  ;;  %v2689_v63 = vmul.f32 %v2687_v60, %v2666_v59 }
 0xa12   :  { %v2718_v1 = vmul.f32 %v2716_v0, %v2666_v59  ;;  %v2747_v2 = vmul.f32 %v2745_v58, %v2666_v59 }
 0xa13   :  { %v2690_v4 = vadd.f32 %v2689_v63, %v2684_v25 }
 0xa14   :  { %v2719_v5 = vadd.f32 %v2718_v1, %v2713_v62  ;;  %v2748_v6 = vadd.f32 %v2747_v2, %v2742_v28 }
 0xa15   :  { %v2691_v9 = vmul.f32 %v2690_v4, %v2672_v3 }
 0xa16   :  { %v2720_v11 = vmul.f32 %v2719_v5, %v2672_v3  ;;  %v2749_v12 = vmul.f32 %v2748_v6, %v2672_v3 }
 0xa17   :  { %v2693_v13 = vrot.slane %v2691_v9, 2  ;;  %v2696_v18 = vrot.slane %v2691_v9, 4  ;;  %v2699_v26 = vrot.slane %v2691_v9, 6 }
 0xa18   :  { %v2722_v14 = vrot.slane %v2720_v11, 2  ;;  %v2751_v15 = vrot.slane %v2749_v12, 2  ;;  %v2725_v21 = vrot.slane %v2720_v11, 4  ;;  %v2754_v23 = vrot.slane %v2749_v12, 4 }
 0xa19   :  { %v2695_v17 = vadd.f32 %v2693_v13, %v2691_v9  ;;  %v2728_v29 = vrot.slane %v2720_v11, 6  ;;  %v2757_v30 = vrot.slane %v2749_v12, 6 }
 0xa1a   :  { %v2724_v20 = vadd.f32 %v2722_v14, %v2720_v11  ;;  %v2753_v22 = vadd.f32 %v2751_v15, %v2749_v12 }
 0xa1b   :  { %v2698_v24 = vadd.f32 %v2696_v18, %v2695_v17 }
 0xa1c   :  { %v2727_v27 = vadd.f32 %v2725_v21, %v2724_v20  ;;  %v2756_v51 = vadd.f32 %v2754_v23, %v2753_v22 }
 0xa1d   :  { %v2701_v54 = vadd.f32 %v2699_v26, %v2698_v24 }
 0xa1e   :  { %v2730_v31 = vadd.f32 %v2728_v29, %v2727_v27  ;;  %v2759_v32 = vadd.f32 %v2757_v30, %v2756_v51 }
 0xa1f   :  { %2702 = vst [vmem:[%s4119_s9] sm:$0x3] %v2701_v54 }
 0xa20   :  { %2731 = vst [vmem:[%s4119_s9 + $0x2] sm:$0x3] %v2730_v31  ;;  %2760 = vst [vmem:[%s4119_s9 + $0x4] sm:$0x3] %v2759_v32 }
 0xa21   :  { %2765 = vsyncpa [#allocation5], 1 }
 0xa22   :  { %2766 = vsyncmov [#allocation3] }
 0xa25   :  { %s2767_s2 = vpop.sfrf %2766 }
 0xa26   :  { %p3095_p1 = scmp.ne.s32.totalorder %s2767_s2, 0 }
 0xa28   :  { %2771 = shalt.err (%p3095_p1)  }
 0xa29   :  { %2773 = vsyncmov [#allocation3 + $0x1] }
 0xa2c   :  { %s2774_s11 = vpop.sfrf %2773 }
 0xa2d   :  { %p3096_p2 = scmp.ne.s32.totalorder %s2774_s11, 0 }
 0xa2f   :  { %2778 = shalt.err (%p3096_p2)  }

</bundles_post_ra>
